<compile_context>
chip_gen: v7x
topology: tpu7x:2x2x1
jax: 0.10.0
libtpu: 0.0.40
codegen_flags: <defaults>
</compile_context>

<pallas_src>
import jax
import jax.numpy as jnp
from jax import lax
from jax.experimental import pallas as pl
from jax.experimental.pallas import tpu as pltpu

BN_EPS = 1e-5
NORM_EPS = 1e-12  # F.normalize default eps


def resbottle_head_kernel(label_ref, x_ref, ff_hbm, w1_ref, bias_ref,
                          w2_ref, b2_ref, out_ref, wsel_buf, sem):
    batch = wsel_buf.shape[0]

    # Fused gather of Ff.fc.weight[label]: one (1, C) row DMA per batch
    # element, all issued before any wait so they overlap.
    for b in range(batch):
        pltpu.make_async_copy(
            ff_hbm.at[pl.ds(label_ref[b], 1), :],
            wsel_buf.at[pl.ds(b, 1), :],
            sem.at[b],
        ).start()
    for b in range(batch):
        pltpu.make_async_copy(
            ff_hbm.at[pl.ds(label_ref[b], 1), :],
            wsel_buf.at[pl.ds(b, 1), :],
            sem.at[b],
        ).wait()

    x = x_ref[...]        # (B, C) f32 flattened backbone features
    w = wsel_buf[...]     # (B, C) f32 gathered classifier rows
    xw = x * w

    # toalign scalar = sqrt(eng_org / eng_aft).  No eps guard, matching the
    # reference toalign code (assumes the selected fc row / xw is non-zero).
    eng_org = jnp.sum(x * x, axis=1, keepdims=True)
    eng_aft = jnp.sum(xw * xw, axis=1, keepdims=True)
    scalar = jnp.sqrt(eng_org) * lax.rsqrt(eng_aft)

    # First linear (eval-mode BN folded into w1_eff / bias_eff in the wrapper).
    # Weight stored bf16 for the HBM stream, upcast here so the activation
    # path and accumulation stay f32.  The toalign scalar is hoisted out of
    # the matmul algebraically: (xw * scalar) @ w1 == scalar * (xw @ w1).
    h = jnp.dot(xw, w1_ref[...].astype(jnp.float32),
                preferred_element_type=jnp.float32)
    h = scalar * h + bias_ref[...]
    h = jnp.maximum(h, 0.0)                       # ReLU

    # Linear(512, feature_dim, bias=True)
    out = jnp.dot(h, w2_ref[...].astype(jnp.float32),
                  preferred_element_type=jnp.float32) + b2_ref[...]

    # F.normalize(out, dim=-1): out / max(||out||, eps)
    sumsq = jnp.sum(out * out, axis=-1, keepdims=True)
    out_ref[...] = out * lax.rsqrt(jnp.maximum(sumsq, NORM_EPS * NORM_EPS))


def resbottle_forward(x, label, ff_fc_weight, params):
    """x: (B, 2048, 1, 1) backbone output (NCHW).

    Returns (x_flat, F.normalize(g(x * w_pos), dim=-1)) matching
    ResBottle.forward(x, label, Ff) downstream of the backbone.
    """
    w1, gamma, beta, rmean, rvar, w2, b2 = params
    B = x.shape[0]
    C = x.shape[1] * x.shape[2] * x.shape[3]

    x_flat = x.reshape(B, C)                 # torch.flatten(x, start_dim=1)
    hidden = w1.shape[1]
    feat_dim = w2.shape[1]

    # Fold eval-mode BatchNorm1d into the (bias-free) first linear.
    inv_std = lax.rsqrt(rvar + BN_EPS)               # (1, 512)
    bn_scale = gamma * inv_std                        # (1, 512)
    w1_eff = (w1 * bn_scale).astype(jnp.bfloat16)     # (2048, 512) bf16
    bias_eff = beta - rmean * bn_scale                # (1, 512) f32
    w2_bf16 = w2.astype(jnp.bfloat16)                 # (512, feat_dim) bf16

    label_i32 = label.astype(jnp.int32)

    cost = pl.CostEstimate(
        flops=2 * B * C * hidden + 2 * B * hidden * feat_dim,
        transcendentals=4 * B,
        bytes_accessed=(w1_eff.size * 2 + w2_bf16.size * 2
                        + x_flat.size * 4 + B * C * 4          # x + gathered rows
                        + bias_eff.size * 4 + b2.size * 4
                        + B * feat_dim * 4),
    )

    out_norm = pl.pallas_call(
        resbottle_head_kernel,
        out_shape=jax.ShapeDtypeStruct((B, feat_dim), jnp.float32),
        grid_spec=pltpu.PrefetchScalarGridSpec(
            num_scalar_prefetch=1,           # label -> SMEM
            grid=(1,),                       # single step: whole head in one body
            in_specs=[
                pl.BlockSpec((B, C), lambda i, lbl: (0, 0)),            # x_flat
                pl.BlockSpec(memory_space=pl.ANY),                      # Ff.fc.weight (HBM)
                pl.BlockSpec((C, hidden), lambda i, lbl: (0, 0)),       # w1_eff (bf16)
                pl.BlockSpec((1, hidden), lambda i, lbl: (0, 0)),       # bias_eff
                pl.BlockSpec((hidden, feat_dim), lambda i, lbl: (0, 0)),  # w2 (bf16)
                pl.BlockSpec((1, feat_dim), lambda i, lbl: (0, 0)),     # b2
            ],
            out_specs=pl.BlockSpec((B, feat_dim), lambda i, lbl: (0, 0)),
            scratch_shapes=[
                pltpu.VMEM((B, C), jnp.float32),        # gathered fc rows
                pltpu.SemaphoreType.DMA((B,)),          # one sem per row DMA
            ],
        ),
        compiler_params=pltpu.CompilerParams(
            dimension_semantics=("arbitrary",)),
        cost_estimate=cost,
    )(label_i32, x_flat, ff_fc_weight, w1_eff, bias_eff, w2_bf16, b2)

    # First return value of forward(): the un-reweighted flattened features,
    # returned straight from the wrapper (no kernel round trip).
    return x_flat, out_norm


def _reference(x_flat, label, ff_fc_weight, w1_eff_bf16, bias_eff, w2_bf16, b2):
    """Pure-JAX reference using the same folded / bf16-stored weights."""
    w = ff_fc_weight[label]
    eng_org = jnp.sum(x_flat * x_flat, axis=1, keepdims=True)
    eng_aft = jnp.sum((x_flat * w) ** 2, axis=1, keepdims=True)
    scalar = jnp.sqrt(eng_org / eng_aft)
    obj = x_flat * (w * scalar)
    h = obj @ w1_eff_bf16.astype(jnp.float32) + bias_eff
    h = jnp.maximum(h, 0.0)
    out = h @ w2_bf16.astype(jnp.float32) + b2
    norm = jnp.sqrt(jnp.maximum(jnp.sum(out * out, -1, keepdims=True),
                                NORM_EPS * NORM_EPS))
    return out / norm


if __name__ == "__main__":
    B = 2
    C_FEAT = 2048       # ResNet50 backbone output channels (self.dim)
    HIDDEN = 512
    FEAT_DIM = 128
    NUM_CLASSES = 10

    key = jax.random.PRNGKey(0)
    k_x, k_ff, k_w1, k_w2, k_b2 = jax.random.split(key, 5)

    # backbone output feature map (B, 2048, 1, 1) — NCHW, spatial collapsed
    x = jax.random.normal(k_x, (B, C_FEAT, 1, 1), dtype=jnp.float32)
    label = jnp.array([1, 7], dtype=jnp.int32)

    # Ff.fc.weight: (num_classes, 2048) classifier weights
    ff_fc_weight = jax.random.normal(k_ff, (NUM_CLASSES, C_FEAT), jnp.float32) * 0.05

    # g = Linear(2048,512,bias=False) -> BatchNorm1d(512) -> ReLU -> Linear(512,128)
    w1 = jax.random.normal(k_w1, (C_FEAT, HIDDEN), jnp.float32) * 0.02   # pre-transposed
    gamma = jnp.ones((1, HIDDEN), jnp.float32)
    beta = jnp.zeros((1, HIDDEN), jnp.float32)
    rmean = jnp.zeros((1, HIDDEN), jnp.float32)
    rvar = jnp.ones((1, HIDDEN), jnp.float32)
    w2 = jax.random.normal(k_w2, (HIDDEN, FEAT_DIM), jnp.float32) * 0.05  # pre-transposed
    b2 = (jax.random.normal(k_b2, (FEAT_DIM,), jnp.float32) * 0.01).reshape(1, FEAT_DIM)

    params = (w1, gamma, beta, rmean, rvar, w2, b2)

    fwd = jax.jit(resbottle_forward)
    x_flat, out_norm = fwd(x, label, ff_fc_weight, params)
    jax.block_until_ready((x_flat, out_norm))

    assert x_flat.shape == (B, C_FEAT)
    assert out_norm.shape == (B, FEAT_DIM)

    # Correctness check against a pure-JAX reference (same folded weights).
    inv_std = lax.rsqrt(rvar + BN_EPS)
    bn_scale = gamma * inv_std
    ref = _reference(x.reshape(B, C_FEAT), label, ff_fc_weight,
                     (w1 * bn_scale).astype(jnp.bfloat16),
                     beta - rmean * bn_scale, w2.astype(jnp.bfloat16), b2)
    assert jnp.allclose(out_norm, ref, rtol=1e-2, atol=1e-3), (
        float(jnp.max(jnp.abs(out_norm - ref))))

    print("KERNEL_OK")
</pallas_src>

<mosaic_0001>
module attributes {stable_mosaic.version = 11 : i64} {
  func.func @resbottle_head_kernel(%arg0: i32, %arg1: memref<2xi32, #tpu.memory_space<smem>>, %arg2: memref<2x2048xf32, #tpu.memory_space<vmem>>, %arg3: memref<10x2048xf32, #tpu.memory_space<any>>, %arg4: memref<2048x512xbf16, #tpu.memory_space<vmem>>, %arg5: memref<1x512xf32, #tpu.memory_space<vmem>>, %arg6: memref<512x128xbf16, #tpu.memory_space<vmem>>, %arg7: memref<1x128xf32, #tpu.memory_space<vmem>>, %arg8: memref<2x128xf32, #tpu.memory_space<vmem>>, %arg9: memref<2x2048xf32, #tpu.memory_space<vmem>>, %arg10: memref<2x!tpu.dma_semaphore, #tpu.memory_space<semaphore_mem>>) attributes {dimension_semantics = [#tpu.dimension_semantics<arbitrary>], iteration_bounds = array<i64: 1>, scalar_prefetch = 1 : i64, scratch_operands = 2 : i64, tpu.core_type = #tpu.core_type<tc>, window_params = [{pipeline_mode = #tpu.pipeline_mode<synchronous>, transform_indices = @transform_0, window_bounds = array<i64: 2, 2048>}, {}, {pipeline_mode = #tpu.pipeline_mode<synchronous>, transform_indices = @transform_2, window_bounds = array<i64: 2048, 512>}, {pipeline_mode = #tpu.pipeline_mode<synchronous>, transform_indices = @transform_3, window_bounds = array<i64: 1, 512>}, {pipeline_mode = #tpu.pipeline_mode<synchronous>, transform_indices = @transform_4, window_bounds = array<i64: 512, 128>}, {pipeline_mode = #tpu.pipeline_mode<synchronous>, transform_indices = @transform_5, window_bounds = array<i64: 1, 128>}, {pipeline_mode = #tpu.pipeline_mode<synchronous>, transform_indices = @transform_6, window_bounds = array<i64: 2, 128>}]} {
    %c0 = arith.constant 0 : index
    %0 = memref.load %arg1[%c0] : memref<2xi32, #tpu.memory_space<smem>>
    %c0_i32 = arith.constant 0 : i32
    %c0_i32_0 = arith.constant 0 : i32
    %1 = tpu.memref_slice %arg3[%0, %c0_i32_0] : memref<10x2048xf32, #tpu.memory_space<any>> -> memref<1x2048xf32, #tpu.memory_space<any>>
    %c0_i32_1 = arith.constant 0 : i32
    %c0_i32_2 = arith.constant 0 : i32
    %2 = tpu.memref_slice %arg9[%c0_i32_1, %c0_i32_2] : memref<2x2048xf32, #tpu.memory_space<vmem>> -> memref<1x2048xf32, #tpu.memory_space<vmem>>
    %3 = tpu.memref_slice %arg10[%c0_i32] : memref<2x!tpu.dma_semaphore, #tpu.memory_space<semaphore_mem>> -> memref<1x!tpu.dma_semaphore, #tpu.memory_space<semaphore_mem>>
    %4 = tpu.memref_squeeze %3 : memref<1x!tpu.dma_semaphore, #tpu.memory_space<semaphore_mem>> -> memref<!tpu.dma_semaphore, #tpu.memory_space<semaphore_mem>>
    tpu.enqueue_dma source(%1 : memref<1x2048xf32, #tpu.memory_space<any>>) target(%2 : memref<1x2048xf32, #tpu.memory_space<vmem>>) target_semaphore(%4 : memref<!tpu.dma_semaphore, #tpu.memory_space<semaphore_mem>>)
    %c1 = arith.constant 1 : index
    %5 = memref.load %arg1[%c1] : memref<2xi32, #tpu.memory_space<smem>>
    %c1_i32 = arith.constant 1 : i32
    %c0_i32_3 = arith.constant 0 : i32
    %6 = tpu.memref_slice %arg3[%5, %c0_i32_3] : memref<10x2048xf32, #tpu.memory_space<any>> -> memref<1x2048xf32, #tpu.memory_space<any>>
    %c1_i32_4 = arith.constant 1 : i32
    %c0_i32_5 = arith.constant 0 : i32
    %7 = tpu.memref_slice %arg9[%c1_i32_4, %c0_i32_5] : memref<2x2048xf32, #tpu.memory_space<vmem>> -> memref<1x2048xf32, #tpu.memory_space<vmem>>
    %8 = tpu.memref_slice %arg10[%c1_i32] : memref<2x!tpu.dma_semaphore, #tpu.memory_space<semaphore_mem>> -> memref<1x!tpu.dma_semaphore, #tpu.memory_space<semaphore_mem>>
    %9 = tpu.memref_squeeze %8 : memref<1x!tpu.dma_semaphore, #tpu.memory_space<semaphore_mem>> -> memref<!tpu.dma_semaphore, #tpu.memory_space<semaphore_mem>>
    tpu.enqueue_dma source(%6 : memref<1x2048xf32, #tpu.memory_space<any>>) target(%7 : memref<1x2048xf32, #tpu.memory_space<vmem>>) target_semaphore(%9 : memref<!tpu.dma_semaphore, #tpu.memory_space<semaphore_mem>>)
    %c0_6 = arith.constant 0 : index
    %10 = memref.load %arg1[%c0_6] : memref<2xi32, #tpu.memory_space<smem>>
    %c0_i32_7 = arith.constant 0 : i32
    %c0_i32_8 = arith.constant 0 : i32
    %11 = tpu.memref_slice %arg3[%10, %c0_i32_8] : memref<10x2048xf32, #tpu.memory_space<any>> -> memref<1x2048xf32, #tpu.memory_space<any>>
    %c0_i32_9 = arith.constant 0 : i32
    %c0_i32_10 = arith.constant 0 : i32
    %12 = tpu.memref_slice %arg9[%c0_i32_9, %c0_i32_10] : memref<2x2048xf32, #tpu.memory_space<vmem>> -> memref<1x2048xf32, #tpu.memory_space<vmem>>
    %13 = tpu.memref_slice %arg10[%c0_i32_7] : memref<2x!tpu.dma_semaphore, #tpu.memory_space<semaphore_mem>> -> memref<1x!tpu.dma_semaphore, #tpu.memory_space<semaphore_mem>>
    %14 = tpu.memref_squeeze %13 : memref<1x!tpu.dma_semaphore, #tpu.memory_space<semaphore_mem>> -> memref<!tpu.dma_semaphore, #tpu.memory_space<semaphore_mem>>
    tpu.wait_dma2 semaphore(%14 : memref<!tpu.dma_semaphore, #tpu.memory_space<semaphore_mem>>) src(%11 : memref<1x2048xf32, #tpu.memory_space<any>>) dst(%12 : memref<1x2048xf32, #tpu.memory_space<vmem>>)
    %c1_11 = arith.constant 1 : index
    %15 = memref.load %arg1[%c1_11] : memref<2xi32, #tpu.memory_space<smem>>
    %c1_i32_12 = arith.constant 1 : i32
    %c0_i32_13 = arith.constant 0 : i32
    %16 = tpu.memref_slice %arg3[%15, %c0_i32_13] : memref<10x2048xf32, #tpu.memory_space<any>> -> memref<1x2048xf32, #tpu.memory_space<any>>
    %c1_i32_14 = arith.constant 1 : i32
    %c0_i32_15 = arith.constant 0 : i32
    %17 = tpu.memref_slice %arg9[%c1_i32_14, %c0_i32_15] : memref<2x2048xf32, #tpu.memory_space<vmem>> -> memref<1x2048xf32, #tpu.memory_space<vmem>>
    %18 = tpu.memref_slice %arg10[%c1_i32_12] : memref<2x!tpu.dma_semaphore, #tpu.memory_space<semaphore_mem>> -> memref<1x!tpu.dma_semaphore, #tpu.memory_space<semaphore_mem>>
    %19 = tpu.memref_squeeze %18 : memref<1x!tpu.dma_semaphore, #tpu.memory_space<semaphore_mem>> -> memref<!tpu.dma_semaphore, #tpu.memory_space<semaphore_mem>>
    tpu.wait_dma2 semaphore(%19 : memref<!tpu.dma_semaphore, #tpu.memory_space<semaphore_mem>>) src(%16 : memref<1x2048xf32, #tpu.memory_space<any>>) dst(%17 : memref<1x2048xf32, #tpu.memory_space<vmem>>)
    %c0_16 = arith.constant 0 : index
    %c0_17 = arith.constant 0 : index
    %20 = vector.load %arg2[%c0_16, %c0_17] : memref<2x2048xf32, #tpu.memory_space<vmem>>, vector<2x2048xf32>
    %c0_18 = arith.constant 0 : index
    %c0_19 = arith.constant 0 : index
    %21 = vector.load %arg9[%c0_18, %c0_19] : memref<2x2048xf32, #tpu.memory_space<vmem>>, vector<2x2048xf32>
    %22 = arith.mulf %20, %21 : vector<2x2048xf32>
    %23 = arith.mulf %20, %20 : vector<2x2048xf32>
    %cst = arith.constant dense<0.000000e+00> : vector<2xf32>
    %24 = vector.multi_reduction <add>, %23, %cst [1] : vector<2x2048xf32> to vector<2xf32>
    %25 = vector.shape_cast %24 : vector<2xf32> to vector<2x1xf32>
    %26 = arith.mulf %22, %22 : vector<2x2048xf32>
    %cst_20 = arith.constant dense<0.000000e+00> : vector<2xf32>
    %27 = vector.multi_reduction <add>, %26, %cst_20 [1] : vector<2x2048xf32> to vector<2xf32>
    %28 = vector.shape_cast %27 : vector<2xf32> to vector<2x1xf32>
    %29 = math.sqrt %25 : vector<2x1xf32>
    %30 = math.rsqrt %28 : vector<2x1xf32>
    %31 = arith.mulf %29, %30 : vector<2x1xf32>
    %c0_21 = arith.constant 0 : index
    %c0_22 = arith.constant 0 : index
    %32 = vector.load %arg4[%c0_21, %c0_22] : memref<2048x512xbf16, #tpu.memory_space<vmem>>, vector<2048x512xbf16>
    %33 = arith.extf %32 : vector<2048x512xbf16> to vector<2048x512xf32>
    %cst_23 = arith.constant dense<0.000000e+00> : vector<2x512xf32>
    %34 = tpu.matmul %22, %33, %cst_23 {dimension_numbers = #tpu.dot_dimension_numbers<[1], [0], [0], [1], [0, 0, 1, 1], [], []>} : vector<2x2048xf32>, vector<2048x512xf32>, vector<2x512xf32> -> vector<2x512xf32>
    %35 = vector.broadcast %31 : vector<2x1xf32> to vector<2x512xf32>
    %36 = arith.mulf %35, %34 : vector<2x512xf32>
    %c0_24 = arith.constant 0 : index
    %c0_25 = arith.constant 0 : index
    %37 = vector.load %arg5[%c0_24, %c0_25] : memref<1x512xf32, #tpu.memory_space<vmem>>, vector<1x512xf32>
    %38 = vector.broadcast %37 : vector<1x512xf32> to vector<2x512xf32>
    %39 = arith.addf %36, %38 : vector<2x512xf32>
    %cst_26 = arith.constant 0.000000e+00 : f32
    %40 = vector.broadcast %cst_26 : f32 to vector<2x512xf32>
    %41 = arith.maximumf %39, %40 : vector<2x512xf32>
    %c0_27 = arith.constant 0 : index
    %c0_28 = arith.constant 0 : index
    %42 = vector.load %arg6[%c0_27, %c0_28] : memref<512x128xbf16, #tpu.memory_space<vmem>>, vector<512x128xbf16>
    %43 = arith.extf %42 : vector<512x128xbf16> to vector<512x128xf32>
    %cst_29 = arith.constant dense<0.000000e+00> : vector<2x128xf32>
    %44 = tpu.matmul %41, %43, %cst_29 {dimension_numbers = #tpu.dot_dimension_numbers<[1], [0], [0], [1], [0, 0, 1, 1], [], []>} : vector<2x512xf32>, vector<512x128xf32>, vector<2x128xf32> -> vector<2x128xf32>
    %c0_30 = arith.constant 0 : index
    %c0_31 = arith.constant 0 : index
    %45 = vector.load %arg7[%c0_30, %c0_31] : memref<1x128xf32, #tpu.memory_space<vmem>>, vector<1x128xf32>
    %46 = vector.broadcast %45 : vector<1x128xf32> to vector<2x128xf32>
    %47 = arith.addf %44, %46 : vector<2x128xf32>
    %48 = arith.mulf %47, %47 : vector<2x128xf32>
    %cst_32 = arith.constant dense<0.000000e+00> : vector<2xf32>
    %49 = vector.multi_reduction <add>, %48, %cst_32 [1] : vector<2x128xf32> to vector<2xf32>
    %50 = vector.shape_cast %49 : vector<2xf32> to vector<2x1xf32>
    %cst_33 = arith.constant 1.000000e-24 : f32
    %51 = vector.broadcast %cst_33 : f32 to vector<2x1xf32>
    %52 = arith.maximumf %50, %51 : vector<2x1xf32>
    %53 = math.rsqrt %52 : vector<2x1xf32>
    %54 = vector.broadcast %53 : vector<2x1xf32> to vector<2x128xf32>
    %55 = arith.mulf %47, %54 : vector<2x128xf32>
    %c0_34 = arith.constant 0 : index
    %c0_35 = arith.constant 0 : index
    %56 = vector.load %arg8[%c0_34, %c0_35] : memref<2x128xf32, #tpu.memory_space<vmem>>, vector<2x128xf32>
    tpu.vector_store %arg8[%c0_34, %c0_35], %55 {strides = array<i32>} : memref<2x128xf32, #tpu.memory_space<vmem>>, vector<2x128xf32>,
    return
  }
  func.func @transform_0(%arg0: i32, %arg1: memref<2xi32, #tpu.memory_space<smem>>) -> (i32, i32) {
    %c0_i32 = arith.constant 0 : i32
    %c0_i32_0 = arith.constant 0 : i32
    %c0_i32_1 = arith.constant 0 : i32
    return %c0_i32, %c0_i32_0 : i32, i32
  }
  func.func @transform_2(%arg0: i32, %arg1: memref<2xi32, #tpu.memory_space<smem>>) -> (i32, i32) {
    %c0_i32 = arith.constant 0 : i32
    %c0_i32_0 = arith.constant 0 : i32
    %c0_i32_1 = arith.constant 0 : i32
    return %c0_i32, %c0_i32_0 : i32, i32
  }
  func.func @transform_3(%arg0: i32, %arg1: memref<2xi32, #tpu.memory_space<smem>>) -> (i32, i32) {
    %c0_i32 = arith.constant 0 : i32
    %c0_i32_0 = arith.constant 0 : i32
    %c0_i32_1 = arith.constant 0 : i32
    return %c0_i32, %c0_i32_0 : i32, i32
  }
  func.func @transform_4(%arg0: i32, %arg1: memref<2xi32, #tpu.memory_space<smem>>) -> (i32, i32) {
    %c0_i32 = arith.constant 0 : i32
    %c0_i32_0 = arith.constant 0 : i32
    %c0_i32_1 = arith.constant 0 : i32
    return %c0_i32, %c0_i32_0 : i32, i32
  }
  func.func @transform_5(%arg0: i32, %arg1: memref<2xi32, #tpu.memory_space<smem>>) -> (i32, i32) {
    %c0_i32 = arith.constant 0 : i32
    %c0_i32_0 = arith.constant 0 : i32
    %c0_i32_1 = arith.constant 0 : i32
    return %c0_i32, %c0_i32_0 : i32, i32
  }
  func.func @transform_6(%arg0: i32, %arg1: memref<2xi32, #tpu.memory_space<smem>>) -> (i32, i32) {
    %c0_i32 = arith.constant 0 : i32
    %c0_i32_0 = arith.constant 0 : i32
    %c0_i32_1 = arith.constant 0 : i32
    return %c0_i32, %c0_i32_0 : i32, i32
  }
}

</mosaic_0001>

<bundles_post_ra>
// kernel: resbottle_forward.1
= control target key start
LH: loop header
LB: loop body
LE: loop exit
PB: predicated region body
PF: predicated region fallthrough
CT: control target
= control target key end

     0   :  { %s8289_s0 = inlined_call_operand.vmem [shape: s32[2], index: 0, kind: input, shape index: {}]   ;;  %s8290_s1 = inlined_call_operand.vmem [shape: f32[2,2048], index: 1, kind: input, shape index: {}]   ;;  %s8291_s2 = inlined_call_operand.vmem [shape: f32[10,2048], index: 2, kind: input, shape index: {}]   ;;  %s8292_s3 = inlined_call_operand.vmem [shape: bf16[2048,512], index: 3, kind: input, shape index: {}]   ;;  %s8293_s4 = inlined_call_operand.vmem [shape: f32[1,512], index: 4, kind: input, shape index: {}]   ;;  %s8294_s5 = inlined_call_operand.vmem [shape: bf16[512,128], index: 5, kind: input, shape index: {}]   ;;  %s8295_s6 = inlined_call_operand.vmem [shape: f32[1,128], index: 6, kind: input, shape index: {}]   ;;  %s8296_s7 = inlined_call_operand.hbm [shape: f32[2,128], index: 7, kind: output, shape index: {}]  }
   0x1   :  { %s12_s26 = sshll.u32 %s8289_s0, 4  ;;  %s13_s26 = int_to_ptr.vmem [resolvable:$true] %s12_s26 }
   0x2   :  { %s6325_s27 = scalar_lea.vmem %s13_s26, 16  ;;  %p6330_p1 = scmp.lt.s32.totalorder %s13_s26, %s13_s26 }
   0x3   :  { %p6326_p0 = scmp.ne.s32.totalorder %s13_s26, %s6325_s27  ;;  %p6331_p2 = scmp.lt.s32.totalorder %s6325_s27, %s6325_s27 }
   0x5   :  { %p6332_p3 = por %p6331_p2, %p6330_p1 }
   0x7   :  { %p6333_p4 = pnand %p6332_p3, %p6326_p0 }
   0x9   :  { %6336 = shalt.err (!%p6333_p4)  }
   0xa   :  { %s6367_s28 = smov [#allocation5]  }
   0xb   :  { %15 = dma.vmem_to_smem %s13_s26, 16, %s6367_s28, [#allocation4] }
   0xc   :  { %6359 = dma.done.wait [#allocation4], 16 }
   0xd   :  { %6360 = vsyncadd [#allocation4], 4294967280 }
   0xe   :  { %17 = sfence }
   0xf   :  { %18 = vsyncpa [#allocation7], 0  ;;  %s29_s29 = sld [smem:[#allocation5]] }
  0x15   :  { %s30_s30 = sshrl.u32 %s29_s29, 3  ;;  %s31_s8 = sand.u32 7, %s29_s29  }
  0x16   :  { %s3685_s9 = sshll.u32 %s30_s30, 7 }
  0x17   :  { %s33_s10 = sadd.s32 %s3685_s9, %s31_s8 }
  0x18   :  { %s6416_s12 = scalar_lea.vmem %s8291_s2, %s33_s10 }
  0x19   :  { %v52_v0 = vld [vmem:[%s6416_s12] sm:$0x1]  ;;  %v54_v1 = vld [vmem:[%s6416_s12 + $0x8] sm:$0x1]  ;;  %v56_v2 = vld [vmem:[%s6416_s12 + $0x10] sm:$0x1] }
  0x1a   :  { %53 = vst [vmem:[#allocation2] sm:$0x1] %v52_v0  ;;  %55 = vst [vmem:[#allocation2 + $0x2] sm:$0x1] %v54_v1  ;;  %v58_v3 = vld [vmem:[%s6416_s12 + $0x18] sm:$0x1] }
  0x1b   :  { %57 = vst [vmem:[#allocation2 + $0x4] sm:$0x1] %v56_v2  ;;  %v60_v4 = vld [vmem:[%s6416_s12 + $0x20] sm:$0x1]  ;;  %v62_v5 = vld [vmem:[%s6416_s12 + $0x28] sm:$0x1] }
  0x1c   :  { %59 = vst [vmem:[#allocation2 + $0x6] sm:$0x1] %v58_v3  ;;  %61 = vst [vmem:[#allocation2 + $0x8] sm:$0x1] %v60_v4  ;;  %v64_v6 = vld [vmem:[%s6416_s12 + $0x30] sm:$0x1] }
  0x1d   :  { %63 = vst [vmem:[#allocation2 + $0xa] sm:$0x1] %v62_v5  ;;  %v66_v7 = vld [vmem:[%s6416_s12 + $0x38] sm:$0x1]  ;;  %v68_v8 = vld [vmem:[%s6416_s12 + $0x40] sm:$0x1] }
  0x1e   :  { %65 = vst [vmem:[#allocation2 + $0xc] sm:$0x1] %v64_v6  ;;  %67 = vst [vmem:[#allocation2 + $0xe] sm:$0x1] %v66_v7  ;;  %v70_v9 = vld [vmem:[%s6416_s12 + $0x48] sm:$0x1] }
  0x1f   :  { %69 = vst [vmem:[#allocation2 + $0x10] sm:$0x1] %v68_v8  ;;  %v72_v10 = vld [vmem:[%s6416_s12 + $0x50] sm:$0x1]  ;;  %v74_v11 = vld [vmem:[%s6416_s12 + $0x58] sm:$0x1] }
  0x20   :  { %71 = vst [vmem:[#allocation2 + $0x12] sm:$0x1] %v70_v9  ;;  %73 = vst [vmem:[#allocation2 + $0x14] sm:$0x1] %v72_v10  ;;  %v76_v12 = vld [vmem:[%s6416_s12 + $0x60] sm:$0x1] }
  0x21   :  { %75 = vst [vmem:[#allocation2 + $0x16] sm:$0x1] %v74_v11  ;;  %v78_v13 = vld [vmem:[%s6416_s12 + $0x68] sm:$0x1]  ;;  %v80_v14 = vld [vmem:[%s6416_s12 + $0x70] sm:$0x1] }
  0x22   :  { %77 = vst [vmem:[#allocation2 + $0x18] sm:$0x1] %v76_v12  ;;  %79 = vst [vmem:[#allocation2 + $0x1a] sm:$0x1] %v78_v13  ;;  %v82_v15 = vld [vmem:[%s6416_s12 + $0x78] sm:$0x1] }
  0x23   :  { %81 = vst [vmem:[#allocation2 + $0x1c] sm:$0x1] %v80_v14  ;;  %83 = vst [vmem:[#allocation2 + $0x1e] sm:$0x1] %v82_v15 }
  0x24   :  { %146 = vsyncadd [#allocation3], 256  ;;  %s3686_s13 = sld [smem:[#allocation5 + $0x1]] }
  0x2a   :  { %s148_s14 = sshrl.u32 %s3686_s13, 3  ;;  %s149_s15 = sand.u32 7, %s3686_s13  }
  0x2b   :  { %s3687_s16 = sshll.u32 %s148_s14, 7 }
  0x2c   :  { %s151_s17 = sadd.s32 %s3687_s16, %s149_s15 }
  0x2d   :  { %s6437_s20 = scalar_lea.vmem %s8291_s2, %s151_s17 }
  0x2e   :  { %v172_v16 = vld [vmem:[%s6437_s20] sm:$0x1]  ;;  %v174_v17 = vld [vmem:[%s6437_s20 + $0x8] sm:$0x1]  ;;  %v176_v18 = vld [vmem:[%s6437_s20 + $0x10] sm:$0x1] }
  0x2f   :  { %173 = vst [vmem:[#allocation2 + $0x1] sm:$0x1] %v172_v16  ;;  %175 = vst [vmem:[#allocation2 + $0x3] sm:$0x1] %v174_v17  ;;  %v178_v19 = vld [vmem:[%s6437_s20 + $0x18] sm:$0x1] }
  0x30   :  { %177 = vst [vmem:[#allocation2 + $0x5] sm:$0x1] %v176_v18  ;;  %v180_v20 = vld [vmem:[%s6437_s20 + $0x20] sm:$0x1]  ;;  %v182_v21 = vld [vmem:[%s6437_s20 + $0x28] sm:$0x1] }
  0x31   :  { %179 = vst [vmem:[#allocation2 + $0x7] sm:$0x1] %v178_v19  ;;  %181 = vst [vmem:[#allocation2 + $0x9] sm:$0x1] %v180_v20  ;;  %v184_v22 = vld [vmem:[%s6437_s20 + $0x30] sm:$0x1] }
  0x32   :  { %183 = vst [vmem:[#allocation2 + $0xb] sm:$0x1] %v182_v21  ;;  %v186_v23 = vld [vmem:[%s6437_s20 + $0x38] sm:$0x1]  ;;  %v188_v24 = vld [vmem:[%s6437_s20 + $0x40] sm:$0x1] }
  0x33   :  { %185 = vst [vmem:[#allocation2 + $0xd] sm:$0x1] %v184_v22  ;;  %187 = vst [vmem:[#allocation2 + $0xf] sm:$0x1] %v186_v23  ;;  %v190_v25 = vld [vmem:[%s6437_s20 + $0x48] sm:$0x1] }
  0x34   :  { %189 = vst [vmem:[#allocation2 + $0x11] sm:$0x1] %v188_v24  ;;  %v192_v26 = vld [vmem:[%s6437_s20 + $0x50] sm:$0x1]  ;;  %v194_v27 = vld [vmem:[%s6437_s20 + $0x58] sm:$0x1] }
  0x35   :  { %191 = vst [vmem:[#allocation2 + $0x13] sm:$0x1] %v190_v25  ;;  %193 = vst [vmem:[#allocation2 + $0x15] sm:$0x1] %v192_v26  ;;  %v196_v28 = vld [vmem:[%s6437_s20 + $0x60] sm:$0x1] }
  0x36   :  { %195 = vst [vmem:[#allocation2 + $0x17] sm:$0x1] %v194_v27  ;;  %v198_v29 = vld [vmem:[%s6437_s20 + $0x68] sm:$0x1]  ;;  %v200_v30 = vld [vmem:[%s6437_s20 + $0x70] sm:$0x1] }
  0x37   :  { %197 = vst [vmem:[#allocation2 + $0x19] sm:$0x1] %v196_v28  ;;  %199 = vst [vmem:[#allocation2 + $0x1b] sm:$0x1] %v198_v29  ;;  %v202_v31 = vld [vmem:[%s6437_s20 + $0x78] sm:$0x1] }
  0x38   :  { %201 = vst [vmem:[#allocation2 + $0x1d] sm:$0x1] %v200_v30  ;;  %203 = vst [vmem:[#allocation2 + $0x1f] sm:$0x1] %v202_v31 }
  0x39   :  { %266 = vsyncadd [#allocation3 + $0x1], 256 }
  0x3a   :  { %6361 = dma.done.wait [#allocation3], 256 }
  0x3b   :  { %6362 = vsyncadd [#allocation3], 4294967040 }
  0x3c   :  { %6363 = dma.done.wait [#allocation3 + $0x1], 256 }
  0x3d   :  { %6364 = vsyncadd [#allocation3 + $0x1], 4294967040  ;;  %v5551_v32 = vld [vmem:[%s8292_s3 + $0x4] ss:$16 sps:$4 sm:$0xff]   ;;  %v5553_v33 = vld [vmem:[%s8292_s3 + $0xc] ss:$16 sps:$4 sm:$0xff]   ;;  %v298_v8 = vlaneseq }
  0x3e   :  { %3921 = vmatprep.subr.bf16.mxu0 %v5551_v32  ;;  %v5555_v34 = vld [vmem:[%s8292_s3] ss:$16 sps:$4 sm:$0xff]   ;;  %v5556_v35 = vld [vmem:[%s8292_s3 + $0x8] ss:$16 sps:$4 sm:$0xff]   ;;  %4433 = vmatprep.subr.bf16.mxu1 %v5553_v33  ;;  %v5557_v36 = vld [vmem:[%s8292_s3 + $0x24] ss:$16 sps:$4 sm:$0xff]  }
  0x3f   :  { %3923 = vmatpush1.bf16.msra.mxu0 %v5555_v34  ;;  %4435 = vmatpush1.bf16.msra.mxu1 %v5556_v35  ;;  %v5559_v37 = vld [vmem:[%s8292_s3 + $0x2c] ss:$16 sps:$4 sm:$0xff]   ;;  %v5561_v38 = vld [vmem:[%s8292_s3 + $0x20] ss:$16 sps:$4 sm:$0xff]   ;;  %v5562_v39 = vld [vmem:[%s8292_s3 + $0x28] ss:$16 sps:$4 sm:$0xff]  }
  0x40   :  { %3925 = vmatprep.subr.bf16.mxu0 %v5557_v36  ;;  %4437 = vmatprep.subr.bf16.mxu1 %v5559_v37  ;;  %v5563_v40 = vld [vmem:[%s8292_s3 + $0x44] ss:$16 sps:$4 sm:$0xff]   ;;  %v5565_v41 = vld [vmem:[%s8292_s3 + $0x4c] ss:$16 sps:$4 sm:$0xff]   ;;  %v5567_v42 = vld [vmem:[%s8292_s3 + $0x40] ss:$16 sps:$4 sm:$0xff]  }
  0x41   :  { %v5568_v43 = vld [vmem:[%s8292_s3 + $0x48] ss:$16 sps:$4 sm:$0xff]   ;;  %v5569_v44 = vld [vmem:[%s8292_s3 + $0x64] ss:$16 sps:$4 sm:$0xff]   ;;  %v5571_v45 = vld [vmem:[%s8292_s3 + $0x6c] ss:$16 sps:$4 sm:$0xff]  }
  0x42   :  { %v5573_v46 = vld [vmem:[%s8292_s3 + $0x60] ss:$16 sps:$4 sm:$0xff]   ;;  %v5574_v47 = vld [vmem:[%s8292_s3 + $0x68] ss:$16 sps:$4 sm:$0xff]   ;;  %v5575_v48 = vld [vmem:[%s8292_s3 + $0x84] ss:$16 sps:$4 sm:$0xff]  }
  0x43   :  { %3927 = vmatpush1.bf16.msra.mxu0 %v5561_v38  ;;  %4439 = vmatpush1.bf16.msra.mxu1 %v5562_v39  ;;  %v5577_v49 = vld [vmem:[%s8292_s3 + $0x8c] ss:$16 sps:$4 sm:$0xff]   ;;  %v5579_v50 = vld [vmem:[%s8292_s3 + $0x80] ss:$16 sps:$4 sm:$0xff]   ;;  %v5580_v51 = vld [vmem:[%s8292_s3 + $0x88] ss:$16 sps:$4 sm:$0xff]  }
  0x44   :  { %3929 = vmatprep.subr.bf16.mxu0 %v5563_v40  ;;  %4441 = vmatprep.subr.bf16.mxu1 %v5565_v41  ;;  %v5581_v52 = vld [vmem:[%s8292_s3 + $0xa4] ss:$16 sps:$4 sm:$0xff]   ;;  %v5583_v53 = vld [vmem:[%s8292_s3 + $0xac] ss:$16 sps:$4 sm:$0xff]   ;;  %v5585_v54 = vld [vmem:[%s8292_s3 + $0xa0] ss:$16 sps:$4 sm:$0xff]  }
  0x45   :  { %v5586_v55 = vld [vmem:[%s8292_s3 + $0xa8] ss:$16 sps:$4 sm:$0xff]   ;;  %v5587_v56 = vld [vmem:[%s8292_s3 + $0xc4] ss:$16 sps:$4 sm:$0xff]   ;;  %v5589_v57 = vld [vmem:[%s8292_s3 + $0xcc] ss:$16 sps:$4 sm:$0xff]  }
  0x46   :  { %v5591_v58 = vld [vmem:[%s8292_s3 + $0xc0] ss:$16 sps:$4 sm:$0xff]   ;;  %v5592_v59 = vld [vmem:[%s8292_s3 + $0xc8] ss:$16 sps:$4 sm:$0xff]   ;;  %v5593_v60 = vld [vmem:[%s8292_s3 + $0xe4] ss:$16 sps:$4 sm:$0xff]  }
  0x47   :  { %3931 = vmatpush1.bf16.msra.mxu0 %v5567_v42  ;;  %4443 = vmatpush1.bf16.msra.mxu1 %v5568_v43  ;;  %v5595_v61 = vld [vmem:[%s8292_s3 + $0xec] ss:$16 sps:$4 sm:$0xff]   ;;  %v5597_v62 = vld [vmem:[%s8292_s3 + $0xe0] ss:$16 sps:$4 sm:$0xff]   ;;  %v5598_v63 = vld [vmem:[%s8292_s3 + $0xe8] ss:$16 sps:$4 sm:$0xff]  }
  0x48   :  { %3933 = vmatprep.subr.bf16.mxu0 %v5569_v44  ;;  %4445 = vmatprep.subr.bf16.mxu1 %v5571_v45  ;;  %v5599_v0 = vld [vmem:[%s8292_s3 + $0x104] ss:$16 sps:$4 sm:$0xff]   ;;  %v5601_v1 = vld [vmem:[%s8292_s3 + $0x10c] ss:$16 sps:$4 sm:$0xff]   ;;  %v5603_v2 = vld [vmem:[%s8292_s3 + $0x100] ss:$16 sps:$4 sm:$0xff]  }
  0x49   :  { %v5604_v3 = vld [vmem:[%s8292_s3 + $0x108] ss:$16 sps:$4 sm:$0xff]   ;;  %v5605_v4 = vld [vmem:[%s8292_s3 + $0x124] ss:$16 sps:$4 sm:$0xff]   ;;  %v5607_v5 = vld [vmem:[%s8292_s3 + $0x12c] ss:$16 sps:$4 sm:$0xff]  }
  0x4a   :  { %v6368_v6 = vmov 1983009808   ;;  %v5609_v9 = vld [vmem:[%s8292_s3 + $0x120] ss:$16 sps:$4 sm:$0xff]   ;;  %v5610_v10 = vld [vmem:[%s8292_s3 + $0x128] ss:$16 sps:$4 sm:$0xff]  }
  0x4b   :  { %3935 = vmatpush1.bf16.msra.mxu0 %v5573_v46  ;;  %4447 = vmatpush1.bf16.msra.mxu1 %v5574_v47  ;;  %v296_v7 = vunpack.c.l.s4 %v6368_v6  ;;  %v5611_v11 = vld [vmem:[%s8292_s3 + $0x144] ss:$16 sps:$4 sm:$0xff]   ;;  %v5613_v12 = vld [vmem:[%s8292_s3 + $0x14c] ss:$16 sps:$4 sm:$0xff]   ;;  %v6581_v14 = vshrl.u32 %v298_v8, 7  ;;  %vm378_vm0 = vcmask 1041408  }
  0x4c   :  { %3937 = vmatprep.subr.bf16.mxu0 %v5575_v48  ;;  %4449 = vmatprep.subr.bf16.mxu1 %v5577_v49  ;;  %v5615_v15 = vld [vmem:[%s8292_s3 + $0x140] ss:$16 sps:$4 sm:$0xff]   ;;  %v5616_v16 = vld [vmem:[%s8292_s3 + $0x148] ss:$16 sps:$4 sm:$0xff]   ;;  %v5617_v17 = vld [vmem:[%s8292_s3 + $0x164] ss:$16 sps:$4 sm:$0xff]  }
  0x4d   :  { %v297_v13 = vunpack.c.0.s8 %v296_v7  ;;  %v5619_v18 = vld [vmem:[%s8292_s3 + $0x16c] ss:$16 sps:$4 sm:$0xff]   ;;  %v6598_v19 = vld [vmem:[%s8290_s1] sm:$0xff]  ;;  %v5622_v23 = vld [vmem:[%s8292_s3 + $0x168] ss:$16 sps:$4 sm:$0xff]   ;;  %s6369_s27 = smov [#allocation6]  }
  0x4e   :  { %v278_v21 = vld [vmem:[#allocation2] sm:$0xff]  ;;  %v5625_v26 = vld [vmem:[%s8292_s3 + $0x18c] ss:$16 sps:$4 sm:$0xff]   ;;  %v5628_v29 = vld [vmem:[%s8292_s3 + $0x188] ss:$16 sps:$4 sm:$0xff]   ;;  %s3629_s28 = sshll.u32 %s6369_s27, 4  ;;  %s3630_s28 = int_to_ptr.vmem [resolvable:$true] %s3629_s28 }
  0x4f   :  { %3939 = vmatpush1.bf16.msra.mxu0 %v5579_v50  ;;  %4451 = vmatpush1.bf16.msra.mxu1 %v5580_v51  ;;  %v6601_v20 = vsub.s32 %v297_v13, %v6581_v14  ;;  %v5621_v22 = vld [vmem:[%s8292_s3 + $0x160] ss:$16 sps:$4 sm:$0xff]   ;;  %v6610_v24 = vmul.f32 %v278_v21, %v6598_v19  ;;  %v5623_v25 = vld [vmem:[%s8292_s3 + $0x184] ss:$16 sps:$4 sm:$0xff]   ;;  %v5631_v32 = vld [vmem:[%s8292_s3 + $0x1ac] ss:$16 sps:$4 sm:$0xff]   ;;  %p6342_p6 = scmp.lt.s32.totalorder %s3630_s28, %s3630_s28 }
  0x50   :  { %3941 = vmatprep.subr.bf16.mxu0 %v5581_v52  ;;  %4453 = vmatprep.subr.bf16.mxu1 %v5583_v53  ;;  %v5627_v28 = vld [vmem:[%s8292_s3 + $0x180] ss:$16 sps:$4 sm:$0xff]   ;;  %v5629_v30 = vld [vmem:[%s8292_s3 + $0x1a4] ss:$16 sps:$4 sm:$0xff]   ;;  %v5634_v34 = vld [vmem:[%s8292_s3 + $0x1a8] ss:$16 sps:$4 sm:$0xff]  }
  0x51   :  { %v2093_v27 = vrot.slane %v6610_v24, %v6601_v20  ;;  %v5633_v33 = vld [vmem:[%s8292_s3 + $0x1a0] ss:$16 sps:$4 sm:$0xff]   ;;  %v5635_v35 = vld [vmem:[%s8292_s3 + $0x1c4] ss:$16 sps:$4 sm:$0xff]   ;;  %v5637_v36 = vld [vmem:[%s8292_s3 + $0x1cc] ss:$16 sps:$4 sm:$0xff]   ;;  %v2086_v41 = vcombine.high %v6610_v24, %v6610_v24 }
  0x52   :  { %v5639_v37 = vld [vmem:[%s8292_s3 + $0x1c0] ss:$16 sps:$4 sm:$0xff]   ;;  %v5640_v38 = vld [vmem:[%s8292_s3 + $0x1c8] ss:$16 sps:$4 sm:$0xff]   ;;  %v5641_v39 = vld [vmem:[%s8292_s3 + $0x1e4] ss:$16 sps:$4 sm:$0xff]  }
  0x53   :  { %3943 = vmatpush1.bf16.msra.mxu0 %v5585_v54  ;;  %4455 = vmatpush1.bf16.msra.mxu1 %v5586_v55  ;;  %v2101_v31 = vcombine.high %v2093_v27, %v2093_v27  ;;  %v5643_v40 = vld [vmem:[%s8292_s3 + $0x1ec] ss:$16 sps:$4 sm:$0xff]   ;;  %v5645_v42 = vld [vmem:[%s8292_s3 + $0x1e0] ss:$16 sps:$4 sm:$0xff]   ;;  %v5646_v43 = vld [vmem:[%s8292_s3 + $0x1e8] ss:$16 sps:$4 sm:$0xff]   ;;  %v6671_v46 = vrot.slane %v2086_v41, %v6601_v20 }
  0x54   :  { %3945 = vmatprep.subr.bf16.mxu0 %v5587_v56  ;;  %4457 = vmatprep.subr.bf16.mxu1 %v5589_v57  ;;  %v5647_v44 = vld [vmem:[%s8292_s3 + $0x204] ss:$16 sps:$4 sm:$0xff]   ;;  %v5650_v45 = vld [vmem:[%s8292_s3 + $0x20c] ss:$16 sps:$4 sm:$0xff]   ;;  %v5649_v47 = vld [vmem:[%s8292_s3 + $0x200] ss:$16 sps:$4 sm:$0xff]  }
  0x55   :  { %2234 = vmatprep.mubr.f32.mxu0 %v2101_v31  ;;  %2802 = vmatprep.mubr.f32.mxu1 %v2101_v31  ;;  %v5652_v48 = vld [vmem:[%s8292_s3 + $0x208] ss:$16 sps:$4 sm:$0xff]   ;;  %v5653_v49 = vld [vmem:[%s8292_s3 + $0x224] ss:$16 sps:$4 sm:$0xff]   ;;  %v5656_v50 = vld [vmem:[%s8292_s3 + $0x22c] ss:$16 sps:$4 sm:$0xff]   ;;  %v2102_v51 = vcombine.high %v6671_v46, %v6671_v46 }
  0x56   :  { %v5655_v52 = vld [vmem:[%s8292_s3 + $0x220] ss:$16 sps:$4 sm:$0xff]   ;;  %v5658_v53 = vld [vmem:[%s8292_s3 + $0x228] ss:$16 sps:$4 sm:$0xff]   ;;  %v5659_v54 = vld [vmem:[%s8292_s3 + $0x244] ss:$16 sps:$4 sm:$0xff]  }
  0x57   :  { %3947 = vmatpush1.bf16.msra.mxu0 %v5591_v58  ;;  %4459 = vmatpush1.bf16.msra.mxu1 %v5592_v59  ;;  %v5662_v55 = vld [vmem:[%s8292_s3 + $0x24c] ss:$16 sps:$4 sm:$0xff]   ;;  %v5661_v56 = vld [vmem:[%s8292_s3 + $0x240] ss:$16 sps:$4 sm:$0xff]   ;;  %v5664_v57 = vld [vmem:[%s8292_s3 + $0x248] ss:$16 sps:$4 sm:$0xff]  }
  0x58   :  { %3949 = vmatprep.subr.bf16.mxu0 %v5593_v60  ;;  %4461 = vmatprep.subr.bf16.mxu1 %v5595_v61  ;;  %v5665_v58 = vld [vmem:[%s8292_s3 + $0x264] ss:$16 sps:$4 sm:$0xff]   ;;  %v5668_v59 = vld [vmem:[%s8292_s3 + $0x26c] ss:$16 sps:$4 sm:$0xff]   ;;  %v5667_v60 = vld [vmem:[%s8292_s3 + $0x260] ss:$16 sps:$4 sm:$0xff]  }
  0x59   :  { %v5670_v61 = vld [vmem:[%s8292_s3 + $0x268] ss:$16 sps:$4 sm:$0xff]   ;;  %v5683_v6 = vld [vmem:[%s8292_s3 + $0x2c4] ss:$16 sps:$4 sm:$0xff]   ;;  %v5686_v7 = vld [vmem:[%s8292_s3 + $0x2cc] ss:$16 sps:$4 sm:$0xff]  }
  0x5a   :  { %v5685_v8 = vld [vmem:[%s8292_s3 + $0x2c0] ss:$16 sps:$4 sm:$0xff]   ;;  %v5694_v13 = vld [vmem:[%s8292_s3 + $0x2e8] ss:$16 sps:$4 sm:$0xff]   ;;  %v5701_v21 = vld [vmem:[%s8292_s3 + $0x324] ss:$16 sps:$4 sm:$0xff]  }
  0x5b   :  { %3951 = vmatpush1.bf16.msra.mxu0 %v5597_v62  ;;  %4463 = vmatpush1.bf16.msra.mxu1 %v5598_v63  ;;  %v5671_v62 = vld [vmem:[%s8292_s3 + $0x284] ss:$16 sps:$4 sm:$0xff]   ;;  %v5674_v63 = vld [vmem:[%s8292_s3 + $0x28c] ss:$16 sps:$4 sm:$0xff]  }
  0x5c   :  { %3953 = vmatprep.subr.bf16.mxu0 %v5599_v0  ;;  %4465 = vmatprep.subr.bf16.mxu1 %v5601_v1  ;;  %v5673_v0 = vld [vmem:[%s8292_s3 + $0x280] ss:$16 sps:$4 sm:$0xff]   ;;  %v5676_v1 = vld [vmem:[%s8292_s3 + $0x288] ss:$16 sps:$4 sm:$0xff]   ;;  %v5716_v31 = vld [vmem:[%s8292_s3 + $0x36c] ss:$16 sps:$4 sm:$0xff]  }
  0x5f   :  { %3955 = vmatpush1.bf16.msra.mxu0 %v5603_v2  ;;  %4467 = vmatpush1.bf16.msra.mxu1 %v5604_v3  ;;  %v5677_v2 = vld [vmem:[%s8292_s3 + $0x2a4] ss:$16 sps:$4 sm:$0xff]   ;;  %v5680_v3 = vld [vmem:[%s8292_s3 + $0x2ac] ss:$16 sps:$4 sm:$0xff]  }
  0x60   :  { %3957 = vmatprep.subr.bf16.mxu0 %v5605_v4  ;;  %4469 = vmatprep.subr.bf16.mxu1 %v5607_v5  ;;  %v5679_v4 = vld [vmem:[%s8292_s3 + $0x2a0] ss:$16 sps:$4 sm:$0xff]   ;;  %v5682_v5 = vld [vmem:[%s8292_s3 + $0x2a8] ss:$16 sps:$4 sm:$0xff]  }
  0x63   :  { %3959 = vmatpush1.bf16.msra.mxu0 %v5609_v9  ;;  %4471 = vmatpush1.bf16.msra.mxu1 %v5610_v10  ;;  %v5688_v9 = vld [vmem:[%s8292_s3 + $0x2c8] ss:$16 sps:$4 sm:$0xff]   ;;  %v5689_v10 = vld [vmem:[%s8292_s3 + $0x2e4] ss:$16 sps:$4 sm:$0xff]  }
  0x64   :  { %3961 = vmatprep.subr.bf16.mxu0 %v5611_v11  ;;  %4473 = vmatprep.subr.bf16.mxu1 %v5613_v12  ;;  %v5692_v11 = vld [vmem:[%s8292_s3 + $0x2ec] ss:$16 sps:$4 sm:$0xff]   ;;  %v5691_v12 = vld [vmem:[%s8292_s3 + $0x2e0] ss:$16 sps:$4 sm:$0xff]  }
  0x67   :  { %3963 = vmatpush1.bf16.msra.mxu0 %v5615_v15  ;;  %4475 = vmatpush1.bf16.msra.mxu1 %v5616_v16  ;;  %v5695_v15 = vld [vmem:[%s8292_s3 + $0x304] ss:$16 sps:$4 sm:$0xff]   ;;  %v5698_v16 = vld [vmem:[%s8292_s3 + $0x30c] ss:$16 sps:$4 sm:$0xff]  }
  0x68   :  { %3965 = vmatprep.subr.bf16.mxu0 %v5617_v17  ;;  %4477 = vmatprep.subr.bf16.mxu1 %v5619_v18  ;;  %v5697_v17 = vld [vmem:[%s8292_s3 + $0x300] ss:$16 sps:$4 sm:$0xff]   ;;  %v5700_v18 = vld [vmem:[%s8292_s3 + $0x308] ss:$16 sps:$4 sm:$0xff]  }
  0x6b   :  { %3967 = vmatpush1.bf16.msra.mxu0 %v5621_v22  ;;  %4479 = vmatpush1.bf16.msra.mxu1 %v5622_v23  ;;  %v5704_v22 = vld [vmem:[%s8292_s3 + $0x32c] ss:$16 sps:$4 sm:$0xff]   ;;  %v5703_v23 = vld [vmem:[%s8292_s3 + $0x320] ss:$16 sps:$4 sm:$0xff]  }
  0x6c   :  { %3969 = vmatprep.subr.bf16.mxu0 %v5623_v25  ;;  %4481 = vmatprep.subr.bf16.mxu1 %v5625_v26  ;;  %v5706_v25 = vld [vmem:[%s8292_s3 + $0x328] ss:$16 sps:$4 sm:$0xff]   ;;  %v5707_v26 = vld [vmem:[%s8292_s3 + $0x344] ss:$16 sps:$4 sm:$0xff]  }
  0x6f   :  { %3971 = vmatpush1.bf16.msra.mxu0 %v5627_v28  ;;  %4483 = vmatpush1.bf16.msra.mxu1 %v5628_v29  ;;  %v5709_v28 = vld [vmem:[%s8292_s3 + $0x340] ss:$16 sps:$4 sm:$0xff]   ;;  %v5712_v29 = vld [vmem:[%s8292_s3 + $0x348] ss:$16 sps:$4 sm:$0xff]  }
  0x70   :  { %3973 = vmatprep.subr.bf16.mxu0 %v5629_v30  ;;  %4485 = vmatprep.subr.bf16.mxu1 %v5631_v32  ;;  %v5713_v30 = vld [vmem:[%s8292_s3 + $0x364] ss:$16 sps:$4 sm:$0xff]   ;;  %v5715_v32 = vld [vmem:[%s8292_s3 + $0x360] ss:$16 sps:$4 sm:$0xff]  }
  0x73   :  { %3975 = vmatpush1.bf16.msra.mxu0 %v5633_v33  ;;  %4487 = vmatpush1.bf16.msra.mxu1 %v5634_v34  ;;  %v286_v33 = vmul.f32 %v6598_v19, %v6598_v19  ;;  %v5718_v34 = vld [vmem:[%s8292_s3 + $0x368] ss:$16 sps:$4 sm:$0xff]   ;;  %v5721_v19 = vld [vmem:[%s8292_s3 + $0x380] ss:$16 sps:$4 sm:$0xff]  }
  0x74   :  { %3977 = vmatprep.subr.bf16.mxu0 %v5635_v35  ;;  %4489 = vmatprep.subr.bf16.mxu1 %v5637_v36  ;;  %v5719_v35 = vld [vmem:[%s8292_s3 + $0x384] ss:$16 sps:$4 sm:$0xff]   ;;  %v5722_v36 = vld [vmem:[%s8292_s3 + $0x38c] ss:$16 sps:$4 sm:$0xff]  }
  0x77   :  { %3979 = vmatpush1.bf16.msra.mxu0 %v5639_v37  ;;  %4491 = vmatpush1.bf16.msra.mxu1 %v5640_v38  ;;  %v412_v37 = vmul.f32 %v6610_v24, %v6610_v24  ;;  %v301_v38 = vrot.slane %v286_v33, %v6601_v20  ;;  %v5728_v24 = vld [vmem:[%s8292_s3 + $0x3ac] ss:$16 sps:$4 sm:$0xff]  }
  0x78   :  { %3981 = vmatprep.subr.bf16.mxu0 %v5641_v39  ;;  %4493 = vmatprep.subr.bf16.mxu1 %v5643_v40  ;;  %v5724_v39 = vld [vmem:[%s8292_s3 + $0x388] ss:$16 sps:$4 sm:$0xff]   ;;  %v5725_v40 = vld [vmem:[%s8292_s3 + $0x3a4] ss:$16 sps:$4 sm:$0xff]  }
  0x79   :  { %v427_v41 = vrot.slane %v412_v37, %v6601_v20 }
  0x7b   :  { %3983 = vmatpush1.bf16.msra.mxu0 %v5645_v42  ;;  %4495 = vmatpush1.bf16.msra.mxu1 %v5646_v43  ;;  %v5727_v42 = vld [vmem:[%s8292_s3 + $0x3a0] ss:$16 sps:$4 sm:$0xff]   ;;  %v294_v43 = vcombine.high %v286_v33, %v286_v33 }
  0x7c   :  { %3985 = vmatprep.subr.bf16.mxu0 %v5647_v44  ;;  %4497 = vmatprep.subr.bf16.mxu1 %v5650_v45  ;;  %v309_v44 = vcombine.high %v301_v38, %v301_v38  ;;  %v5730_v45 = vld [vmem:[%s8292_s3 + $0x3a8] ss:$16 sps:$4 sm:$0xff]  }
  0x7e   :  { %2235 = vmatmul.mubr.f32.vlgmr.msra.gmra.mrb[0].mxu0 %v2093_v27  ;;  %2803 = vmatmul.mubr.f32.vlgmr.msra.gmra.mrb[0].mxu1 %v2093_v27  ;;  %v5710_v27 = vld [vmem:[%s8292_s3 + $0x34c] ss:$16 sps:$4 sm:$0xff]  }
  0x7f   :  { %3987 = vmatpush1.bf16.msra.mxu0 %v5649_v47  ;;  %4499 = vmatpush1.bf16.msra.mxu1 %v5652_v48  ;;  %v5731_v47 = vld [vmem:[%s8292_s3 + $0x3c4] ss:$16 sps:$4 sm:$0xff]   ;;  %v5734_v48 = vld [vmem:[%s8292_s3 + $0x3cc] ss:$16 sps:$4 sm:$0xff]  }
  0x80   :  { %3989 = vmatprep.subr.bf16.mxu0 %v5653_v49  ;;  %4501 = vmatprep.subr.bf16.mxu1 %v5656_v50  ;;  %v379_v49 = vsel %vm378_vm0, %v301_v38, 0.0  ;;  %v420_v50 = vcombine.high %v412_v37, %v412_v37  ;;  %v5761_v37 = vld [vmem:[%s8292_s3 + $0x464] ss:$16 sps:$4 sm:$0xff]  }
  0x81   :  { %2305 = vmatprep.mubr.f32.mxu0 %v2102_v51  ;;  %2873 = vmatprep.mubr.f32.mxu1 %v2102_v51  ;;  %v435_v51 = vcombine.high %v427_v41, %v427_v41 }
  0x83   :  { %3991 = vmatpush1.bf16.msra.mxu0 %v5655_v52  ;;  %4503 = vmatpush1.bf16.msra.mxu1 %v5658_v53  ;;  %v5733_v52 = vld [vmem:[%s8292_s3 + $0x3c0] ss:$16 sps:$4 sm:$0xff]   ;;  %v308_v53 = vrot.slane %v294_v43, %v6601_v20 }
  0x84   :  { %3993 = vmatprep.subr.bf16.mxu0 %v5659_v54  ;;  %4505 = vmatprep.subr.bf16.mxu1 %v5662_v55  ;;  %v380_v54 = vsel %vm378_vm0, %v309_v44, 0.0  ;;  %v5736_v55 = vld [vmem:[%s8292_s3 + $0x3c8] ss:$16 sps:$4 sm:$0xff]   ;;  %v5769_v43 = vld [vmem:[%s8292_s3 + $0x480] ss:$16 sps:$4 sm:$0xff]  }
  0x85   :  { %v5772_v44 = vld [vmem:[%s8292_s3 + $0x488] ss:$16 sps:$4 sm:$0xff]  }
  0x87   :  { %3995 = vmatpush1.bf16.msra.mxu0 %v5661_v56  ;;  %4507 = vmatpush1.bf16.msra.mxu1 %v5664_v57  ;;  %v5737_v56 = vld [vmem:[%s8292_s3 + $0x3e4] ss:$16 sps:$4 sm:$0xff]   ;;  %v5740_v57 = vld [vmem:[%s8292_s3 + $0x3ec] ss:$16 sps:$4 sm:$0xff]  }
  0x88   :  { %3997 = vmatprep.subr.bf16.mxu0 %v5665_v58  ;;  %4509 = vmatprep.subr.bf16.mxu1 %v5668_v59  ;;  %v381_v58 = vadd.f32 %v380_v54, %v379_v49  ;;  %v434_v59 = vrot.slane %v420_v50, %v6601_v20  ;;  %v5778_v49 = vld [vmem:[%s8292_s3 + $0x4a8] ss:$16 sps:$4 sm:$0xff]   ;;  %v5779_v50 = vld [vmem:[%s8292_s3 + $0x4c4] ss:$16 sps:$4 sm:$0xff]  }
  0x89   :  { %v5785_v54 = vld [vmem:[%s8292_s3 + $0x4e4] ss:$16 sps:$4 sm:$0xff]  }
  0x8b   :  { %3999 = vmatpush1.bf16.msra.mxu0 %v5667_v60  ;;  %4511 = vmatpush1.bf16.msra.mxu1 %v5670_v61  ;;  %v504_v60 = vsel %vm378_vm0, %v427_v41, 0.0  ;;  %v505_v61 = vsel %vm378_vm0, %v435_v51, 0.0  ;;  %v5767_v41 = vld [vmem:[%s8292_s3 + $0x484] ss:$16 sps:$4 sm:$0xff]   ;;  %v5782_v51 = vld [vmem:[%s8292_s3 + $0x4cc] ss:$16 sps:$4 sm:$0xff]  }
  0x8c   :  { %4001 = vmatprep.subr.bf16.mxu0 %v5671_v62  ;;  %4513 = vmatprep.subr.bf16.mxu1 %v5674_v63  ;;  %v5739_v62 = vld [vmem:[%s8292_s3 + $0x3e0] ss:$16 sps:$4 sm:$0xff]   ;;  %v310_v63 = vcombine.high %v308_v53, %v308_v53 }
  0x8f   :  { %4003 = vmatpush1.bf16.msra.mxu0 %v5673_v0  ;;  %4515 = vmatpush1.bf16.msra.mxu1 %v5676_v1  ;;  %v382_v0 = vsel %vm378_vm0, %v308_v53, 0.0  ;;  %v5742_v1 = vld [vmem:[%s8292_s3 + $0x3e8] ss:$16 sps:$4 sm:$0xff]  }
  0x90   :  { %4005 = vmatprep.subr.bf16.mxu0 %v5677_v2  ;;  %4517 = vmatprep.subr.bf16.mxu1 %v5680_v3  ;;  %v5743_v2 = vld [vmem:[%s8292_s3 + $0x404] ss:$16 sps:$4 sm:$0xff]   ;;  %v5746_v3 = vld [vmem:[%s8292_s3 + $0x40c] ss:$16 sps:$4 sm:$0xff]   ;;  %v5784_v53 = vld [vmem:[%s8292_s3 + $0x4c8] ss:$16 sps:$4 sm:$0xff]  }
  0x93   :  { %4007 = vmatpush1.bf16.msra.mxu0 %v5679_v4  ;;  %4519 = vmatpush1.bf16.msra.mxu1 %v5682_v5  ;;  %v506_v4 = vadd.f32 %v505_v61, %v504_v60  ;;  %v383_v5 = vadd.f32 %v382_v0, %v381_v58  ;;  %v5791_v58 = vld [vmem:[%s8292_s3 + $0x504] ss:$16 sps:$4 sm:$0xff]   ;;  %v5793_v60 = vld [vmem:[%s8292_s3 + $0x500] ss:$16 sps:$4 sm:$0xff]   ;;  %v5796_v61 = vld [vmem:[%s8292_s3 + $0x508] ss:$16 sps:$4 sm:$0xff]  }
  0x94   :  { %4009 = vmatprep.subr.bf16.mxu0 %v5683_v6  ;;  %4521 = vmatprep.subr.bf16.mxu1 %v5686_v7  ;;  %v436_v6 = vcombine.high %v434_v59, %v434_v59  ;;  %v507_v7 = vsel %vm378_vm0, %v434_v59, 0.0  ;;  %v5794_v59 = vld [vmem:[%s8292_s3 + $0x50c] ss:$16 sps:$4 sm:$0xff]   ;;  %v5799_v0 = vld [vmem:[%s8292_s3 + $0x520] ss:$16 sps:$4 sm:$0xff]  }
  0x97   :  { %4011 = vmatpush1.bf16.msra.mxu0 %v5685_v8  ;;  %4523 = vmatpush1.bf16.msra.mxu1 %v5688_v9  ;;  %v5745_v8 = vld [vmem:[%s8292_s3 + $0x400] ss:$16 sps:$4 sm:$0xff]   ;;  %v5748_v9 = vld [vmem:[%s8292_s3 + $0x408] ss:$16 sps:$4 sm:$0xff]  }
  0x98   :  { %4013 = vmatprep.subr.bf16.mxu0 %v5689_v10  ;;  %4525 = vmatprep.subr.bf16.mxu1 %v5692_v11  ;;  %v384_v10 = vsel %vm378_vm0, %v310_v63, 0.0  ;;  %v5749_v11 = vld [vmem:[%s8292_s3 + $0x424] ss:$16 sps:$4 sm:$0xff]   ;;  %v5800_v63 = vld [vmem:[%s8292_s3 + $0x52c] ss:$16 sps:$4 sm:$0xff]  }
  0x9b   :  { %4015 = vmatpush1.bf16.msra.mxu0 %v5691_v12  ;;  %4527 = vmatpush1.bf16.msra.mxu1 %v5694_v13  ;;  %v5752_v12 = vld [vmem:[%s8292_s3 + $0x42c] ss:$16 sps:$4 sm:$0xff]  }
  0x9c   :  { %4017 = vmatprep.subr.bf16.mxu0 %v5695_v15  ;;  %4529 = vmatprep.subr.bf16.mxu1 %v5698_v16  ;;  %v275_v13 = vld [vmem:[%s8290_s1 + $0x8] sm:$0xff]  ;;  %v508_v16 = vadd.f32 %v507_v7, %v506_v4  ;;  %v5805_v4 = vld [vmem:[%s8292_s3 + $0x540] ss:$16 sps:$4 sm:$0xff]  }
  0x9d   :  { %v279_v15 = vld [vmem:[#allocation2 + $0x8] sm:$0xff] }
  0x9e   :  { %v5812_v7 = vld [vmem:[%s8292_s3 + $0x56c] ss:$16 sps:$4 sm:$0xff]  }
  0x9f   :  { %4019 = vmatpush1.bf16.msra.mxu0 %v5697_v17  ;;  %4531 = vmatpush1.bf16.msra.mxu1 %v5700_v18  ;;  %v6897_v17 = vmul.f32 %v279_v15, %v275_v13  ;;  %v6899_v18 = vmul.f32 %v275_v13, %v275_v13  ;;  %v5820_v13 = vld [vmem:[%s8292_s3 + $0x588] ss:$16 sps:$4 sm:$0xff]   ;;  %v5821_v15 = vld [vmem:[%s8292_s3 + $0x5a4] ss:$16 sps:$4 sm:$0xff]  }
  0xa0   :  { %4021 = vmatprep.subr.bf16.mxu0 %v5701_v21  ;;  %4533 = vmatprep.subr.bf16.mxu1 %v5704_v22  ;;  %v385_v21 = vadd.f32 %v384_v10, %v383_v5  ;;  %v509_v22 = vsel %vm378_vm0, %v436_v6, 0.0  ;;  %v5808_v5 = vld [vmem:[%s8292_s3 + $0x548] ss:$16 sps:$4 sm:$0xff]   ;;  %v5809_v6 = vld [vmem:[%s8292_s3 + $0x564] ss:$16 sps:$4 sm:$0xff]  }
  0xa1   :  { %v5815_v10 = vld [vmem:[%s8292_s3 + $0x584] ss:$16 sps:$4 sm:$0xff]  }
  0xa3   :  { %4023 = vmatpush1.bf16.msra.mxu0 %v5703_v23  ;;  %4535 = vmatpush1.bf16.msra.mxu1 %v5706_v25  ;;  %v5751_v23 = vld [vmem:[%s8292_s3 + $0x420] ss:$16 sps:$4 sm:$0xff]   ;;  %v5754_v25 = vld [vmem:[%s8292_s3 + $0x428] ss:$16 sps:$4 sm:$0xff]  }
  0xa4   :  { %4025 = vmatprep.subr.bf16.mxu0 %v5707_v26  ;;  %4537 = vmatprep.subr.bf16.mxu1 %v5710_v27  ;;  %v6912_v26 = vrot.slane %v6899_v18, %v6601_v20  ;;  %v6916_v27 = vmul.f32 %v6897_v17, %v6897_v17 }
  0xa7   :  { %4027 = vmatpush1.bf16.msra.mxu0 %v5709_v28  ;;  %4539 = vmatpush1.bf16.msra.mxu1 %v5712_v29  ;;  %v5758_v28 = vld [vmem:[%s8292_s3 + $0x44c] ss:$16 sps:$4 sm:$0xff]   ;;  %v6926_v29 = vrot.slane %v6897_v17, %v6601_v20 }
  0xa8   :  { %4029 = vmatprep.subr.bf16.mxu0 %v5713_v30  ;;  %4541 = vmatprep.subr.bf16.mxu1 %v5716_v31  ;;  %v510_v30 = vadd.f32 %v509_v22, %v508_v16  ;;  %v386_v31 = vsel %vm378_vm0, %v6912_v26, 0.0  ;;  %v5824_v16 = vld [vmem:[%s8292_s3 + $0x5ac] ss:$16 sps:$4 sm:$0xff]   ;;  %v5826_v22 = vld [vmem:[%s8292_s3 + $0x5a8] ss:$16 sps:$4 sm:$0xff]  }
  0xa9   :  { %v6933_v33 = vadd.f32 %v386_v31, %v385_v21  ;;  %v5823_v21 = vld [vmem:[%s8292_s3 + $0x5a0] ss:$16 sps:$4 sm:$0xff]   ;;  %v5836_v31 = vld [vmem:[%s8292_s3 + $0x5ec] ss:$16 sps:$4 sm:$0xff]  }
  0xab   :  { %4031 = vmatpush1.bf16.msra.mxu0 %v5715_v32  ;;  %4543 = vmatpush1.bf16.msra.mxu1 %v5718_v34  ;;  %v5757_v32 = vld [vmem:[%s8292_s3 + $0x440] ss:$16 sps:$4 sm:$0xff]   ;;  %v6937_v34 = vrot.slane %v6916_v27, %v6601_v20 }
  0xac   :  { %4033 = vmatprep.subr.bf16.mxu0 %v5719_v35  ;;  %4545 = vmatprep.subr.bf16.mxu1 %v5722_v36  ;;  %v2118_v35 = vcombine.high %v6926_v29, %v6926_v29  ;;  %v5760_v36 = vld [vmem:[%s8292_s3 + $0x448] ss:$16 sps:$4 sm:$0xff]  }
  0xad   :  { %v511_v38 = vsel %vm378_vm0, %v6937_v34, 0.0 }
  0xaf   :  { %4035 = vmatpush1.bf16.msra.mxu0 %v5721_v19  ;;  %4547 = vmatpush1.bf16.msra.mxu1 %v5724_v39  ;;  %v5764_v19 = vld [vmem:[%s8292_s3 + $0x46c] ss:$16 sps:$4 sm:$0xff]   ;;  %v6952_v39 = vadd.f32 %v511_v38, %v510_v30  ;;  %v5833_v30 = vld [vmem:[%s8292_s3 + $0x5e4] ss:$16 sps:$4 sm:$0xff]   ;;  %v5841_v38 = vld [vmem:[%s8292_s3 + $0x600] ss:$16 sps:$4 sm:$0xff]  }
  0xb0   :  { %4037 = vmatprep.subr.bf16.mxu0 %v5725_v40  ;;  %4549 = vmatprep.subr.bf16.mxu1 %v5728_v24  ;;  %v5763_v40 = vld [vmem:[%s8292_s3 + $0x460] ss:$16 sps:$4 sm:$0xff]   ;;  %v5766_v24 = vld [vmem:[%s8292_s3 + $0x468] ss:$16 sps:$4 sm:$0xff]  }
  0xb3   :  { %4039 = vmatpush1.bf16.msra.mxu0 %v5727_v42  ;;  %4551 = vmatpush1.bf16.msra.mxu1 %v5730_v45  ;;  %v5770_v42 = vld [vmem:[%s8292_s3 + $0x48c] ss:$16 sps:$4 sm:$0xff]   ;;  %v5773_v45 = vld [vmem:[%s8292_s3 + $0x4a4] ss:$16 sps:$4 sm:$0xff]  }
  0xb4   :  { %4041 = vmatprep.subr.bf16.mxu0 %v5731_v47  ;;  %4553 = vmatprep.subr.bf16.mxu1 %v5734_v48  ;;  %v5776_v47 = vld [vmem:[%s8292_s3 + $0x4ac] ss:$16 sps:$4 sm:$0xff]   ;;  %v5775_v48 = vld [vmem:[%s8292_s3 + $0x4a0] ss:$16 sps:$4 sm:$0xff]  }
  0xb7   :  { %4043 = vmatpush1.bf16.msra.mxu0 %v5733_v52  ;;  %4555 = vmatpush1.bf16.msra.mxu1 %v5736_v55  ;;  %v5781_v52 = vld [vmem:[%s8292_s3 + $0x4c0] ss:$16 sps:$4 sm:$0xff]   ;;  %v5788_v55 = vld [vmem:[%s8292_s3 + $0x4ec] ss:$16 sps:$4 sm:$0xff]  }
  0xb8   :  { %4045 = vmatprep.subr.bf16.mxu0 %v5737_v56  ;;  %4557 = vmatprep.subr.bf16.mxu1 %v5740_v57  ;;  %v5787_v56 = vld [vmem:[%s8292_s3 + $0x4e0] ss:$16 sps:$4 sm:$0xff]   ;;  %v5790_v57 = vld [vmem:[%s8292_s3 + $0x4e8] ss:$16 sps:$4 sm:$0xff]  }
  0xbb   :  { %4047 = vmatpush1.bf16.msra.mxu0 %v5739_v62  ;;  %4559 = vmatpush1.bf16.msra.mxu1 %v5742_v1  ;;  %v5797_v62 = vld [vmem:[%s8292_s3 + $0x524] ss:$16 sps:$4 sm:$0xff]   ;;  %v5802_v1 = vld [vmem:[%s8292_s3 + $0x528] ss:$16 sps:$4 sm:$0xff]  }
  0xbc   :  { %4049 = vmatprep.subr.bf16.mxu0 %v5743_v2  ;;  %4561 = vmatprep.subr.bf16.mxu1 %v5746_v3  ;;  %v5803_v2 = vld [vmem:[%s8292_s3 + $0x544] ss:$16 sps:$4 sm:$0xff]   ;;  %v5806_v3 = vld [vmem:[%s8292_s3 + $0x54c] ss:$16 sps:$4 sm:$0xff]  }
  0xbe   :  { %2306 = vmatmul.mubr.f32.vlgmr.msra.gmra.mrb[0].mxu0 %v6671_v46  ;;  %2874 = vmatmul.mubr.f32.vlgmr.msra.gmra.mrb[0].mxu1 %v6671_v46  ;;  %v5755_v46 = vld [vmem:[%s8292_s3 + $0x444] ss:$16 sps:$4 sm:$0xff]  }
  0xbf   :  { %4051 = vmatpush1.bf16.msra.mxu0 %v5745_v8  ;;  %4563 = vmatpush1.bf16.msra.mxu1 %v5748_v9  ;;  %v5811_v8 = vld [vmem:[%s8292_s3 + $0x560] ss:$16 sps:$4 sm:$0xff]   ;;  %v5814_v9 = vld [vmem:[%s8292_s3 + $0x568] ss:$16 sps:$4 sm:$0xff]  }
  0xc0   :  { %4053 = vmatprep.subr.bf16.mxu0 %v5749_v11  ;;  %4565 = vmatprep.subr.bf16.mxu1 %v5752_v12  ;;  %v5818_v11 = vld [vmem:[%s8292_s3 + $0x58c] ss:$16 sps:$4 sm:$0xff]   ;;  %v5817_v12 = vld [vmem:[%s8292_s3 + $0x580] ss:$16 sps:$4 sm:$0xff]  }
  0xc1   :  { %2376 = vmatprep.mubr.f32.mxu0 %v2118_v35  ;;  %2944 = vmatprep.mubr.f32.mxu1 %v2118_v35  ;;  %v5835_v35 = vld [vmem:[%s8292_s3 + $0x5e0] ss:$16 sps:$4 sm:$0xff]  }
  0xc3   :  { %4055 = vmatpush1.bf16.msra.mxu0 %v5751_v23  ;;  %4567 = vmatpush1.bf16.msra.mxu1 %v5754_v25  ;;  %v5827_v23 = vld [vmem:[%s8292_s3 + $0x5c4] ss:$16 sps:$4 sm:$0xff]   ;;  %v5830_v25 = vld [vmem:[%s8292_s3 + $0x5cc] ss:$16 sps:$4 sm:$0xff]  }
  0xc4   :  { %4057 = vmatprep.subr.bf16.mxu0 %v5755_v46  ;;  %4569 = vmatprep.subr.bf16.mxu1 %v5758_v28  ;;  %v5829_v46 = vld [vmem:[%s8292_s3 + $0x5c0] ss:$16 sps:$4 sm:$0xff]   ;;  %v5832_v28 = vld [vmem:[%s8292_s3 + $0x5c8] ss:$16 sps:$4 sm:$0xff]  }
  0xc7   :  { %4059 = vmatpush1.bf16.msra.mxu0 %v5757_v32  ;;  %4571 = vmatpush1.bf16.msra.mxu1 %v5760_v36  ;;  %v2103_v32 = vcombine.high %v6897_v17, %v6897_v17  ;;  %v5838_v36 = vld [vmem:[%s8292_s3 + $0x5e8] ss:$16 sps:$4 sm:$0xff]   ;;  %v5842_v17 = vld [vmem:[%s8292_s3 + $0x60c] ss:$16 sps:$4 sm:$0xff]  }
  0xc8   :  { %4061 = vmatprep.subr.bf16.mxu0 %v5761_v37  ;;  %4573 = vmatprep.subr.bf16.mxu1 %v5764_v19  ;;  %v5839_v37 = vld [vmem:[%s8292_s3 + $0x604] ss:$16 sps:$4 sm:$0xff]  }
  0xc9   :  { %v7113_v19 = vrot.slane %v2103_v32, %v6601_v20  ;;  %v5916_v32 = vld [vmem:[%s8292_s3 + $0x788] ss:$16 sps:$4 sm:$0xff]  }
  0xcb   :  { %4063 = vmatpush1.bf16.msra.mxu0 %v5763_v40  ;;  %4575 = vmatpush1.bf16.msra.mxu1 %v5766_v24  ;;  %v5844_v40 = vld [vmem:[%s8292_s3 + $0x608] ss:$16 sps:$4 sm:$0xff]   ;;  %v5845_v24 = vld [vmem:[%s8292_s3 + $0x624] ss:$16 sps:$4 sm:$0xff]  }
  0xcc   :  { %4065 = vmatprep.subr.bf16.mxu0 %v5767_v41  ;;  %4577 = vmatprep.subr.bf16.mxu1 %v5770_v42  ;;  %v5848_v41 = vld [vmem:[%s8292_s3 + $0x62c] ss:$16 sps:$4 sm:$0xff]   ;;  %v2119_v42 = vcombine.high %v7113_v19, %v7113_v19 }
  0xcf   :  { %4067 = vmatpush1.bf16.msra.mxu0 %v5769_v43  ;;  %4579 = vmatpush1.bf16.msra.mxu1 %v5772_v44  ;;  %v5847_v43 = vld [vmem:[%s8292_s3 + $0x620] ss:$16 sps:$4 sm:$0xff]   ;;  %v5850_v44 = vld [vmem:[%s8292_s3 + $0x628] ss:$16 sps:$4 sm:$0xff]  }
  0xd0   :  { %4069 = vmatprep.subr.bf16.mxu0 %v5773_v45  ;;  %4581 = vmatprep.subr.bf16.mxu1 %v5776_v47  ;;  %v5851_v45 = vld [vmem:[%s8292_s3 + $0x644] ss:$16 sps:$4 sm:$0xff]   ;;  %v5853_v47 = vld [vmem:[%s8292_s3 + $0x640] ss:$16 sps:$4 sm:$0xff]  }
  0xd3   :  { %4071 = vmatpush1.bf16.msra.mxu0 %v5775_v48  ;;  %4583 = vmatpush1.bf16.msra.mxu1 %v5778_v49  ;;  %v5856_v48 = vld [vmem:[%s8292_s3 + $0x648] ss:$16 sps:$4 sm:$0xff]   ;;  %v5857_v49 = vld [vmem:[%s8292_s3 + $0x664] ss:$16 sps:$4 sm:$0xff]  }
  0xd4   :  { %4073 = vmatprep.subr.bf16.mxu0 %v5779_v50  ;;  %4585 = vmatprep.subr.bf16.mxu1 %v5782_v51  ;;  %v5860_v50 = vld [vmem:[%s8292_s3 + $0x66c] ss:$16 sps:$4 sm:$0xff]   ;;  %v5859_v51 = vld [vmem:[%s8292_s3 + $0x660] ss:$16 sps:$4 sm:$0xff]  }
  0xd7   :  { %4075 = vmatpush1.bf16.msra.mxu0 %v5781_v52  ;;  %4587 = vmatpush1.bf16.msra.mxu1 %v5784_v53  ;;  %v5862_v52 = vld [vmem:[%s8292_s3 + $0x668] ss:$16 sps:$4 sm:$0xff]   ;;  %v5863_v53 = vld [vmem:[%s8292_s3 + $0x684] ss:$16 sps:$4 sm:$0xff]  }
  0xd8   :  { %4077 = vmatprep.subr.bf16.mxu0 %v5785_v54  ;;  %4589 = vmatprep.subr.bf16.mxu1 %v5788_v55  ;;  %v5866_v54 = vld [vmem:[%s8292_s3 + $0x68c] ss:$16 sps:$4 sm:$0xff]   ;;  %v5865_v55 = vld [vmem:[%s8292_s3 + $0x680] ss:$16 sps:$4 sm:$0xff]  }
  0xdb   :  { %4079 = vmatpush1.bf16.msra.mxu0 %v5787_v56  ;;  %4591 = vmatpush1.bf16.msra.mxu1 %v5790_v57  ;;  %v5868_v56 = vld [vmem:[%s8292_s3 + $0x688] ss:$16 sps:$4 sm:$0xff]   ;;  %v5869_v57 = vld [vmem:[%s8292_s3 + $0x6a4] ss:$16 sps:$4 sm:$0xff]  }
  0xdc   :  { %4081 = vmatprep.subr.bf16.mxu0 %v5791_v58  ;;  %4593 = vmatprep.subr.bf16.mxu1 %v5794_v59  ;;  %v5872_v58 = vld [vmem:[%s8292_s3 + $0x6ac] ss:$16 sps:$4 sm:$0xff]   ;;  %v5871_v59 = vld [vmem:[%s8292_s3 + $0x6a0] ss:$16 sps:$4 sm:$0xff]  }
  0xdf   :  { %4083 = vmatpush1.bf16.msra.mxu0 %v5793_v60  ;;  %4595 = vmatpush1.bf16.msra.mxu1 %v5796_v61  ;;  %v5874_v60 = vld [vmem:[%s8292_s3 + $0x6a8] ss:$16 sps:$4 sm:$0xff]   ;;  %v5875_v61 = vld [vmem:[%s8292_s3 + $0x6c4] ss:$16 sps:$4 sm:$0xff]  }
  0xe0   :  { %4085 = vmatprep.subr.bf16.mxu0 %v5797_v62  ;;  %4597 = vmatprep.subr.bf16.mxu1 %v5800_v63  ;;  %v5878_v62 = vld [vmem:[%s8292_s3 + $0x6cc] ss:$16 sps:$4 sm:$0xff]   ;;  %v5877_v63 = vld [vmem:[%s8292_s3 + $0x6c0] ss:$16 sps:$4 sm:$0xff]  }
  0xe3   :  { %4087 = vmatpush1.bf16.msra.mxu0 %v5799_v0  ;;  %4599 = vmatpush1.bf16.msra.mxu1 %v5802_v1  ;;  %v5880_v0 = vld [vmem:[%s8292_s3 + $0x6c8] ss:$16 sps:$4 sm:$0xff]   ;;  %v5881_v1 = vld [vmem:[%s8292_s3 + $0x6e4] ss:$16 sps:$4 sm:$0xff]  }
  0xe4   :  { %4089 = vmatprep.subr.bf16.mxu0 %v5803_v2  ;;  %4601 = vmatprep.subr.bf16.mxu1 %v5806_v3  ;;  %v5884_v2 = vld [vmem:[%s8292_s3 + $0x6ec] ss:$16 sps:$4 sm:$0xff]   ;;  %v5883_v3 = vld [vmem:[%s8292_s3 + $0x6e0] ss:$16 sps:$4 sm:$0xff]  }
  0xe7   :  { %4091 = vmatpush1.bf16.msra.mxu0 %v5805_v4  ;;  %4603 = vmatpush1.bf16.msra.mxu1 %v5808_v5  ;;  %v5886_v4 = vld [vmem:[%s8292_s3 + $0x6e8] ss:$16 sps:$4 sm:$0xff]   ;;  %v5887_v5 = vld [vmem:[%s8292_s3 + $0x704] ss:$16 sps:$4 sm:$0xff]  }
  0xe8   :  { %4093 = vmatprep.subr.bf16.mxu0 %v5809_v6  ;;  %4605 = vmatprep.subr.bf16.mxu1 %v5812_v7  ;;  %v5890_v6 = vld [vmem:[%s8292_s3 + $0x70c] ss:$16 sps:$4 sm:$0xff]   ;;  %v5889_v7 = vld [vmem:[%s8292_s3 + $0x700] ss:$16 sps:$4 sm:$0xff]  }
  0xeb   :  { %4095 = vmatpush1.bf16.msra.mxu0 %v5811_v8  ;;  %4607 = vmatpush1.bf16.msra.mxu1 %v5814_v9  ;;  %v5892_v8 = vld [vmem:[%s8292_s3 + $0x708] ss:$16 sps:$4 sm:$0xff]   ;;  %v5893_v9 = vld [vmem:[%s8292_s3 + $0x724] ss:$16 sps:$4 sm:$0xff]  }
  0xec   :  { %4097 = vmatprep.subr.bf16.mxu0 %v5815_v10  ;;  %4609 = vmatprep.subr.bf16.mxu1 %v5818_v11  ;;  %v5896_v10 = vld [vmem:[%s8292_s3 + $0x72c] ss:$16 sps:$4 sm:$0xff]   ;;  %v5895_v11 = vld [vmem:[%s8292_s3 + $0x720] ss:$16 sps:$4 sm:$0xff]  }
  0xef   :  { %4099 = vmatpush1.bf16.msra.mxu0 %v5817_v12  ;;  %4611 = vmatpush1.bf16.msra.mxu1 %v5820_v13  ;;  %v5898_v12 = vld [vmem:[%s8292_s3 + $0x728] ss:$16 sps:$4 sm:$0xff]   ;;  %v5899_v13 = vld [vmem:[%s8292_s3 + $0x744] ss:$16 sps:$4 sm:$0xff]  }
  0xf0   :  { %4101 = vmatprep.subr.bf16.mxu0 %v5821_v15  ;;  %4613 = vmatprep.subr.bf16.mxu1 %v5824_v16  ;;  %v5902_v15 = vld [vmem:[%s8292_s3 + $0x74c] ss:$16 sps:$4 sm:$0xff]   ;;  %v5901_v16 = vld [vmem:[%s8292_s3 + $0x740] ss:$16 sps:$4 sm:$0xff]  }
  0xf3   :  { %4103 = vmatpush1.bf16.msra.mxu0 %v5823_v21  ;;  %4615 = vmatpush1.bf16.msra.mxu1 %v5826_v22  ;;  %v5904_v21 = vld [vmem:[%s8292_s3 + $0x748] ss:$16 sps:$4 sm:$0xff]   ;;  %v5905_v22 = vld [vmem:[%s8292_s3 + $0x764] ss:$16 sps:$4 sm:$0xff]  }
  0xf4   :  { %4105 = vmatprep.subr.bf16.mxu0 %v5827_v23  ;;  %4617 = vmatprep.subr.bf16.mxu1 %v5830_v25  ;;  %v5908_v23 = vld [vmem:[%s8292_s3 + $0x76c] ss:$16 sps:$4 sm:$0xff]   ;;  %v5907_v25 = vld [vmem:[%s8292_s3 + $0x760] ss:$16 sps:$4 sm:$0xff]  }
  0xf7   :  { %4107 = vmatpush1.bf16.msra.mxu0 %v5829_v46  ;;  %4619 = vmatpush1.bf16.msra.mxu1 %v5832_v28  ;;  %v5910_v46 = vld [vmem:[%s8292_s3 + $0x768] ss:$16 sps:$4 sm:$0xff]   ;;  %v5911_v28 = vld [vmem:[%s8292_s3 + $0x784] ss:$16 sps:$4 sm:$0xff]  }
  0xf8   :  { %4109 = vmatprep.subr.bf16.mxu0 %v5833_v30  ;;  %4621 = vmatprep.subr.bf16.mxu1 %v5836_v31  ;;  %v5914_v30 = vld [vmem:[%s8292_s3 + $0x78c] ss:$16 sps:$4 sm:$0xff]   ;;  %v5913_v31 = vld [vmem:[%s8292_s3 + $0x780] ss:$16 sps:$4 sm:$0xff]  }
  0xfb   :  { %4111 = vmatpush1.bf16.msra.mxu0 %v5835_v35  ;;  %4623 = vmatpush1.bf16.msra.mxu1 %v5838_v36  ;;  %v5917_v35 = vld [vmem:[%s8292_s3 + $0x7a4] ss:$16 sps:$4 sm:$0xff]   ;;  %v5920_v36 = vld [vmem:[%s8292_s3 + $0x7ac] ss:$16 sps:$4 sm:$0xff]  }
  0xfc   :  { %4113 = vmatprep.subr.bf16.mxu0 %v5839_v37  ;;  %4625 = vmatprep.subr.bf16.mxu1 %v5842_v17  ;;  %v5919_v37 = vld [vmem:[%s8292_s3 + $0x7a0] ss:$16 sps:$4 sm:$0xff]   ;;  %v5922_v17 = vld [vmem:[%s8292_s3 + $0x7a8] ss:$16 sps:$4 sm:$0xff]  }
  0xfe   :  { %2377 = vmatmul.mubr.f32.vlgmr.msra.gmra.mrb[0].mxu0 %v6926_v29  ;;  %2945 = vmatmul.mubr.f32.vlgmr.msra.gmra.mrb[0].mxu1 %v6926_v29  ;;  %v5854_v29 = vld [vmem:[%s8292_s3 + $0x64c] ss:$16 sps:$4 sm:$0xff]  }
  0xff   :  { %4115 = vmatpush1.bf16.msra.mxu0 %v5841_v38  ;;  %4627 = vmatpush1.bf16.msra.mxu1 %v5844_v40  ;;  %v5923_v38 = vld [vmem:[%s8292_s3 + $0x7c4] ss:$16 sps:$4 sm:$0xff]   ;;  %v5926_v40 = vld [vmem:[%s8292_s3 + $0x7cc] ss:$16 sps:$4 sm:$0xff]  }
 0x100   :  { %4117 = vmatprep.subr.bf16.mxu0 %v5845_v24  ;;  %4629 = vmatprep.subr.bf16.mxu1 %v5848_v41  ;;  %v5925_v24 = vld [vmem:[%s8292_s3 + $0x7c0] ss:$16 sps:$4 sm:$0xff]  }
 0x101   :  { %2447 = vmatprep.mubr.f32.mxu0 %v2119_v42  ;;  %3015 = vmatprep.mubr.f32.mxu1 %v2119_v42  ;;  %v7293_v41 = vld [vmem:[%s8290_s1 + $0x10] sm:$0xff] }
 0x102   :  { %v280_v42 = vld [vmem:[#allocation2 + $0x10] sm:$0xff] }
 0x103   :  { %4119 = vmatpush1.bf16.msra.mxu0 %v5847_v43  ;;  %4631 = vmatpush1.bf16.msra.mxu1 %v5850_v44  ;;  %v5928_v43 = vld [vmem:[%s8292_s3 + $0x7c8] ss:$16 sps:$4 sm:$0xff]   ;;  %v5929_v44 = vld [vmem:[%s8292_s3 + $0x7e4] ss:$16 sps:$4 sm:$0xff]  }
 0x104   :  { %4121 = vmatprep.subr.bf16.mxu0 %v5851_v45  ;;  %4633 = vmatprep.subr.bf16.mxu1 %v5854_v29  ;;  %v5932_v45 = vld [vmem:[%s8292_s3 + $0x7ec] ss:$16 sps:$4 sm:$0xff]   ;;  %v7305_v29 = vmul.f32 %v280_v42, %v7293_v41  ;;  %v6003_v42 = vld [vmem:[%s8292_s3 + $0x960] ss:$16 sps:$4 sm:$0xff]  }
 0x107   :  { %4123 = vmatpush1.bf16.msra.mxu0 %v5853_v47  ;;  %4635 = vmatpush1.bf16.msra.mxu1 %v5856_v48  ;;  %v5931_v47 = vld [vmem:[%s8292_s3 + $0x7e0] ss:$16 sps:$4 sm:$0xff]   ;;  %v5934_v48 = vld [vmem:[%s8292_s3 + $0x7e8] ss:$16 sps:$4 sm:$0xff]  }
 0x108   :  { %4125 = vmatprep.subr.bf16.mxu0 %v5857_v49  ;;  %4637 = vmatprep.subr.bf16.mxu1 %v5860_v50  ;;  %v5935_v49 = vld [vmem:[%s8292_s3 + $0x804] ss:$16 sps:$4 sm:$0xff]   ;;  %v5938_v50 = vld [vmem:[%s8292_s3 + $0x80c] ss:$16 sps:$4 sm:$0xff]  }
 0x10b   :  { %4127 = vmatpush1.bf16.msra.mxu0 %v5859_v51  ;;  %4639 = vmatpush1.bf16.msra.mxu1 %v5862_v52  ;;  %v7321_v51 = vrot.slane %v7305_v29, %v6601_v20  ;;  %v5937_v52 = vld [vmem:[%s8292_s3 + $0x800] ss:$16 sps:$4 sm:$0xff]  }
 0x10c   :  { %4129 = vmatprep.subr.bf16.mxu0 %v5863_v53  ;;  %4641 = vmatprep.subr.bf16.mxu1 %v5866_v54  ;;  %v5940_v53 = vld [vmem:[%s8292_s3 + $0x808] ss:$16 sps:$4 sm:$0xff]   ;;  %v5941_v54 = vld [vmem:[%s8292_s3 + $0x824] ss:$16 sps:$4 sm:$0xff]  }
 0x10f   :  { %4131 = vmatpush1.bf16.msra.mxu0 %v5865_v55  ;;  %4643 = vmatpush1.bf16.msra.mxu1 %v5868_v56  ;;  %v5944_v55 = vld [vmem:[%s8292_s3 + $0x82c] ss:$16 sps:$4 sm:$0xff]   ;;  %v2135_v56 = vcombine.high %v7321_v51, %v7321_v51 }
 0x110   :  { %4133 = vmatprep.subr.bf16.mxu0 %v5869_v57  ;;  %4645 = vmatprep.subr.bf16.mxu1 %v5872_v58  ;;  %v5943_v57 = vld [vmem:[%s8292_s3 + $0x820] ss:$16 sps:$4 sm:$0xff]   ;;  %v5946_v58 = vld [vmem:[%s8292_s3 + $0x828] ss:$16 sps:$4 sm:$0xff]  }
 0x113   :  { %4135 = vmatpush1.bf16.msra.mxu0 %v5871_v59  ;;  %4647 = vmatpush1.bf16.msra.mxu1 %v5874_v60  ;;  %v5947_v59 = vld [vmem:[%s8292_s3 + $0x844] ss:$16 sps:$4 sm:$0xff]   ;;  %v5949_v60 = vld [vmem:[%s8292_s3 + $0x840] ss:$16 sps:$4 sm:$0xff]  }
 0x114   :  { %4137 = vmatprep.subr.bf16.mxu0 %v5875_v61  ;;  %4649 = vmatprep.subr.bf16.mxu1 %v5878_v62  ;;  %v5952_v61 = vld [vmem:[%s8292_s3 + $0x848] ss:$16 sps:$4 sm:$0xff]   ;;  %v5953_v62 = vld [vmem:[%s8292_s3 + $0x864] ss:$16 sps:$4 sm:$0xff]  }
 0x117   :  { %4139 = vmatpush1.bf16.msra.mxu0 %v5877_v63  ;;  %4651 = vmatpush1.bf16.msra.mxu1 %v5880_v0  ;;  %v5956_v63 = vld [vmem:[%s8292_s3 + $0x86c] ss:$16 sps:$4 sm:$0xff]   ;;  %v5955_v0 = vld [vmem:[%s8292_s3 + $0x860] ss:$16 sps:$4 sm:$0xff]  }
 0x118   :  { %4141 = vmatprep.subr.bf16.mxu0 %v5881_v1  ;;  %4653 = vmatprep.subr.bf16.mxu1 %v5884_v2  ;;  %v5958_v1 = vld [vmem:[%s8292_s3 + $0x868] ss:$16 sps:$4 sm:$0xff]   ;;  %v5959_v2 = vld [vmem:[%s8292_s3 + $0x884] ss:$16 sps:$4 sm:$0xff]  }
 0x11b   :  { %4143 = vmatpush1.bf16.msra.mxu0 %v5883_v3  ;;  %4655 = vmatpush1.bf16.msra.mxu1 %v5886_v4  ;;  %v5962_v3 = vld [vmem:[%s8292_s3 + $0x88c] ss:$16 sps:$4 sm:$0xff]   ;;  %v5961_v4 = vld [vmem:[%s8292_s3 + $0x880] ss:$16 sps:$4 sm:$0xff]  }
 0x11c   :  { %4145 = vmatprep.subr.bf16.mxu0 %v5887_v5  ;;  %4657 = vmatprep.subr.bf16.mxu1 %v5890_v6  ;;  %v5964_v5 = vld [vmem:[%s8292_s3 + $0x888] ss:$16 sps:$4 sm:$0xff]   ;;  %v5965_v6 = vld [vmem:[%s8292_s3 + $0x8a4] ss:$16 sps:$4 sm:$0xff]  }
 0x11f   :  { %4147 = vmatpush1.bf16.msra.mxu0 %v5889_v7  ;;  %4659 = vmatpush1.bf16.msra.mxu1 %v5892_v8  ;;  %v5968_v7 = vld [vmem:[%s8292_s3 + $0x8ac] ss:$16 sps:$4 sm:$0xff]   ;;  %v5967_v8 = vld [vmem:[%s8292_s3 + $0x8a0] ss:$16 sps:$4 sm:$0xff]  }
 0x120   :  { %4149 = vmatprep.subr.bf16.mxu0 %v5893_v9  ;;  %4661 = vmatprep.subr.bf16.mxu1 %v5896_v10  ;;  %v5970_v9 = vld [vmem:[%s8292_s3 + $0x8a8] ss:$16 sps:$4 sm:$0xff]   ;;  %v5971_v10 = vld [vmem:[%s8292_s3 + $0x8c4] ss:$16 sps:$4 sm:$0xff]  }
 0x123   :  { %4151 = vmatpush1.bf16.msra.mxu0 %v5895_v11  ;;  %4663 = vmatpush1.bf16.msra.mxu1 %v5898_v12  ;;  %v5974_v11 = vld [vmem:[%s8292_s3 + $0x8cc] ss:$16 sps:$4 sm:$0xff]   ;;  %v5973_v12 = vld [vmem:[%s8292_s3 + $0x8c0] ss:$16 sps:$4 sm:$0xff]  }
 0x124   :  { %4153 = vmatprep.subr.bf16.mxu0 %v5899_v13  ;;  %4665 = vmatprep.subr.bf16.mxu1 %v5902_v15  ;;  %v5976_v13 = vld [vmem:[%s8292_s3 + $0x8c8] ss:$16 sps:$4 sm:$0xff]   ;;  %v5977_v15 = vld [vmem:[%s8292_s3 + $0x8e4] ss:$16 sps:$4 sm:$0xff]  }
 0x127   :  { %4155 = vmatpush1.bf16.msra.mxu0 %v5901_v16  ;;  %4667 = vmatpush1.bf16.msra.mxu1 %v5904_v21  ;;  %v5980_v16 = vld [vmem:[%s8292_s3 + $0x8ec] ss:$16 sps:$4 sm:$0xff]   ;;  %v5979_v21 = vld [vmem:[%s8292_s3 + $0x8e0] ss:$16 sps:$4 sm:$0xff]  }
 0x128   :  { %4157 = vmatprep.subr.bf16.mxu0 %v5905_v22  ;;  %4669 = vmatprep.subr.bf16.mxu1 %v5908_v23  ;;  %v5982_v22 = vld [vmem:[%s8292_s3 + $0x8e8] ss:$16 sps:$4 sm:$0xff]   ;;  %v5983_v23 = vld [vmem:[%s8292_s3 + $0x904] ss:$16 sps:$4 sm:$0xff]  }
 0x12b   :  { %4159 = vmatpush1.bf16.msra.mxu0 %v5907_v25  ;;  %4671 = vmatpush1.bf16.msra.mxu1 %v5910_v46  ;;  %v5986_v25 = vld [vmem:[%s8292_s3 + $0x90c] ss:$16 sps:$4 sm:$0xff]   ;;  %v5985_v46 = vld [vmem:[%s8292_s3 + $0x900] ss:$16 sps:$4 sm:$0xff]  }
 0x12c   :  { %4161 = vmatprep.subr.bf16.mxu0 %v5911_v28  ;;  %4673 = vmatprep.subr.bf16.mxu1 %v5914_v30  ;;  %v5988_v28 = vld [vmem:[%s8292_s3 + $0x908] ss:$16 sps:$4 sm:$0xff]   ;;  %v5989_v30 = vld [vmem:[%s8292_s3 + $0x924] ss:$16 sps:$4 sm:$0xff]  }
 0x12f   :  { %4163 = vmatpush1.bf16.msra.mxu0 %v5913_v31  ;;  %4675 = vmatpush1.bf16.msra.mxu1 %v5916_v32  ;;  %v5992_v31 = vld [vmem:[%s8292_s3 + $0x92c] ss:$16 sps:$4 sm:$0xff]   ;;  %v5991_v32 = vld [vmem:[%s8292_s3 + $0x920] ss:$16 sps:$4 sm:$0xff]  }
 0x130   :  { %4165 = vmatprep.subr.bf16.mxu0 %v5917_v35  ;;  %4677 = vmatprep.subr.bf16.mxu1 %v5920_v36  ;;  %v5994_v35 = vld [vmem:[%s8292_s3 + $0x928] ss:$16 sps:$4 sm:$0xff]   ;;  %v5995_v36 = vld [vmem:[%s8292_s3 + $0x944] ss:$16 sps:$4 sm:$0xff]  }
 0x133   :  { %4167 = vmatpush1.bf16.msra.mxu0 %v5919_v37  ;;  %4679 = vmatpush1.bf16.msra.mxu1 %v5922_v17  ;;  %v5998_v37 = vld [vmem:[%s8292_s3 + $0x94c] ss:$16 sps:$4 sm:$0xff]   ;;  %v5997_v17 = vld [vmem:[%s8292_s3 + $0x940] ss:$16 sps:$4 sm:$0xff]  }
 0x134   :  { %4169 = vmatprep.subr.bf16.mxu0 %v5923_v38  ;;  %4681 = vmatprep.subr.bf16.mxu1 %v5926_v40  ;;  %v6000_v38 = vld [vmem:[%s8292_s3 + $0x948] ss:$16 sps:$4 sm:$0xff]   ;;  %v6001_v40 = vld [vmem:[%s8292_s3 + $0x964] ss:$16 sps:$4 sm:$0xff]  }
 0x137   :  { %4171 = vmatpush1.bf16.msra.mxu0 %v5925_v24  ;;  %4683 = vmatpush1.bf16.msra.mxu1 %v5928_v43  ;;  %v6004_v24 = vld [vmem:[%s8292_s3 + $0x96c] ss:$16 sps:$4 sm:$0xff]   ;;  %v6006_v43 = vld [vmem:[%s8292_s3 + $0x968] ss:$16 sps:$4 sm:$0xff]  }
 0x138   :  { %4173 = vmatprep.subr.bf16.mxu0 %v5929_v44  ;;  %4685 = vmatprep.subr.bf16.mxu1 %v5932_v45  ;;  %v6007_v44 = vld [vmem:[%s8292_s3 + $0x984] ss:$16 sps:$4 sm:$0xff]   ;;  %v6010_v45 = vld [vmem:[%s8292_s3 + $0x98c] ss:$16 sps:$4 sm:$0xff]  }
 0x13b   :  { %4175 = vmatpush1.bf16.msra.mxu0 %v5931_v47  ;;  %4687 = vmatpush1.bf16.msra.mxu1 %v5934_v48  ;;  %v6009_v47 = vld [vmem:[%s8292_s3 + $0x980] ss:$16 sps:$4 sm:$0xff]   ;;  %v6012_v48 = vld [vmem:[%s8292_s3 + $0x988] ss:$16 sps:$4 sm:$0xff]  }
 0x13c   :  { %4177 = vmatprep.subr.bf16.mxu0 %v5935_v49  ;;  %4689 = vmatprep.subr.bf16.mxu1 %v5938_v50  ;;  %v6013_v49 = vld [vmem:[%s8292_s3 + $0x9a4] ss:$16 sps:$4 sm:$0xff]   ;;  %v6016_v50 = vld [vmem:[%s8292_s3 + $0x9ac] ss:$16 sps:$4 sm:$0xff]  }
 0x13e   :  { %2448 = vmatmul.mubr.f32.vlgmr.msra.gmra.mrb[0].mxu0 %v7113_v19  ;;  %3016 = vmatmul.mubr.f32.vlgmr.msra.gmra.mrb[0].mxu1 %v7113_v19  ;;  %v5950_v19 = vld [vmem:[%s8292_s3 + $0x84c] ss:$16 sps:$4 sm:$0xff]  }
 0x13f   :  { %4179 = vmatpush1.bf16.msra.mxu0 %v5937_v52  ;;  %4691 = vmatpush1.bf16.msra.mxu1 %v5940_v53  ;;  %v6015_v52 = vld [vmem:[%s8292_s3 + $0x9a0] ss:$16 sps:$4 sm:$0xff]   ;;  %v6018_v53 = vld [vmem:[%s8292_s3 + $0x9a8] ss:$16 sps:$4 sm:$0xff]  }
 0x140   :  { %4181 = vmatprep.subr.bf16.mxu0 %v5941_v54  ;;  %4693 = vmatprep.subr.bf16.mxu1 %v5944_v55  ;;  %v6019_v54 = vld [vmem:[%s8292_s3 + $0x9c4] ss:$16 sps:$4 sm:$0xff]   ;;  %v6022_v55 = vld [vmem:[%s8292_s3 + $0x9cc] ss:$16 sps:$4 sm:$0xff]  }
 0x141   :  { %2518 = vmatprep.mubr.f32.mxu0 %v2135_v56  ;;  %3086 = vmatprep.mubr.f32.mxu1 %v2135_v56  ;;  %v6021_v56 = vld [vmem:[%s8292_s3 + $0x9c0] ss:$16 sps:$4 sm:$0xff]  }
 0x143   :  { %4183 = vmatpush1.bf16.msra.mxu0 %v5943_v57  ;;  %4695 = vmatpush1.bf16.msra.mxu1 %v5946_v58  ;;  %v6024_v57 = vld [vmem:[%s8292_s3 + $0x9c8] ss:$16 sps:$4 sm:$0xff]   ;;  %v6025_v58 = vld [vmem:[%s8292_s3 + $0x9e4] ss:$16 sps:$4 sm:$0xff]  }
 0x144   :  { %4185 = vmatprep.subr.bf16.mxu0 %v5947_v59  ;;  %4697 = vmatprep.subr.bf16.mxu1 %v5950_v19  ;;  %v6028_v59 = vld [vmem:[%s8292_s3 + $0x9ec] ss:$16 sps:$4 sm:$0xff]   ;;  %v2120_v19 = vcombine.high %v7305_v29, %v7305_v29 }
 0x147   :  { %4187 = vmatpush1.bf16.msra.mxu0 %v5949_v60  ;;  %4699 = vmatpush1.bf16.msra.mxu1 %v5952_v61  ;;  %v6027_v60 = vld [vmem:[%s8292_s3 + $0x9e0] ss:$16 sps:$4 sm:$0xff]   ;;  %v6030_v61 = vld [vmem:[%s8292_s3 + $0x9e8] ss:$16 sps:$4 sm:$0xff]  }
 0x148   :  { %4189 = vmatprep.subr.bf16.mxu0 %v5953_v62  ;;  %4701 = vmatprep.subr.bf16.mxu1 %v5956_v63  ;;  %v6031_v62 = vld [vmem:[%s8292_s3 + $0xa04] ss:$16 sps:$4 sm:$0xff]   ;;  %v6034_v63 = vld [vmem:[%s8292_s3 + $0xa0c] ss:$16 sps:$4 sm:$0xff]  }
 0x14b   :  { %4191 = vmatpush1.bf16.msra.mxu0 %v5955_v0  ;;  %4703 = vmatpush1.bf16.msra.mxu1 %v5958_v1  ;;  %v6033_v0 = vld [vmem:[%s8292_s3 + $0xa00] ss:$16 sps:$4 sm:$0xff]   ;;  %v7525_v1 = vrot.slane %v2120_v19, %v6601_v20  ;;  %v6106_v19 = vld [vmem:[%s8292_s3 + $0xb8c] ss:$16 sps:$4 sm:$0xff]  }
 0x14c   :  { %4193 = vmatprep.subr.bf16.mxu0 %v5959_v2  ;;  %4705 = vmatprep.subr.bf16.mxu1 %v5962_v3  ;;  %v6036_v2 = vld [vmem:[%s8292_s3 + $0xa08] ss:$16 sps:$4 sm:$0xff]   ;;  %v6037_v3 = vld [vmem:[%s8292_s3 + $0xa24] ss:$16 sps:$4 sm:$0xff]  }
 0x14f   :  { %4195 = vmatpush1.bf16.msra.mxu0 %v5961_v4  ;;  %4707 = vmatpush1.bf16.msra.mxu1 %v5964_v5  ;;  %v6040_v4 = vld [vmem:[%s8292_s3 + $0xa2c] ss:$16 sps:$4 sm:$0xff]   ;;  %v2136_v5 = vcombine.high %v7525_v1, %v7525_v1 }
 0x150   :  { %4197 = vmatprep.subr.bf16.mxu0 %v5965_v6  ;;  %4709 = vmatprep.subr.bf16.mxu1 %v5968_v7  ;;  %v6039_v6 = vld [vmem:[%s8292_s3 + $0xa20] ss:$16 sps:$4 sm:$0xff]   ;;  %v6042_v7 = vld [vmem:[%s8292_s3 + $0xa28] ss:$16 sps:$4 sm:$0xff]  }
 0x153   :  { %4199 = vmatpush1.bf16.msra.mxu0 %v5967_v8  ;;  %4711 = vmatpush1.bf16.msra.mxu1 %v5970_v9  ;;  %v6043_v8 = vld [vmem:[%s8292_s3 + $0xa44] ss:$16 sps:$4 sm:$0xff]   ;;  %v6045_v9 = vld [vmem:[%s8292_s3 + $0xa40] ss:$16 sps:$4 sm:$0xff]  }
 0x154   :  { %4201 = vmatprep.subr.bf16.mxu0 %v5971_v10  ;;  %4713 = vmatprep.subr.bf16.mxu1 %v5974_v11  ;;  %v6048_v10 = vld [vmem:[%s8292_s3 + $0xa48] ss:$16 sps:$4 sm:$0xff]   ;;  %v6049_v11 = vld [vmem:[%s8292_s3 + $0xa64] ss:$16 sps:$4 sm:$0xff]  }
 0x157   :  { %4203 = vmatpush1.bf16.msra.mxu0 %v5973_v12  ;;  %4715 = vmatpush1.bf16.msra.mxu1 %v5976_v13  ;;  %v6052_v12 = vld [vmem:[%s8292_s3 + $0xa6c] ss:$16 sps:$4 sm:$0xff]   ;;  %v6051_v13 = vld [vmem:[%s8292_s3 + $0xa60] ss:$16 sps:$4 sm:$0xff]  }
 0x158   :  { %4205 = vmatprep.subr.bf16.mxu0 %v5977_v15  ;;  %4717 = vmatprep.subr.bf16.mxu1 %v5980_v16  ;;  %v6054_v15 = vld [vmem:[%s8292_s3 + $0xa68] ss:$16 sps:$4 sm:$0xff]   ;;  %v6055_v16 = vld [vmem:[%s8292_s3 + $0xa84] ss:$16 sps:$4 sm:$0xff]  }
 0x15b   :  { %4207 = vmatpush1.bf16.msra.mxu0 %v5979_v21  ;;  %4719 = vmatpush1.bf16.msra.mxu1 %v5982_v22  ;;  %v6058_v21 = vld [vmem:[%s8292_s3 + $0xa8c] ss:$16 sps:$4 sm:$0xff]   ;;  %v6057_v22 = vld [vmem:[%s8292_s3 + $0xa80] ss:$16 sps:$4 sm:$0xff]  }
 0x15c   :  { %4209 = vmatprep.subr.bf16.mxu0 %v5983_v23  ;;  %4721 = vmatprep.subr.bf16.mxu1 %v5986_v25  ;;  %v6060_v23 = vld [vmem:[%s8292_s3 + $0xa88] ss:$16 sps:$4 sm:$0xff]   ;;  %v6061_v25 = vld [vmem:[%s8292_s3 + $0xaa4] ss:$16 sps:$4 sm:$0xff]  }
 0x15f   :  { %4211 = vmatpush1.bf16.msra.mxu0 %v5985_v46  ;;  %4723 = vmatpush1.bf16.msra.mxu1 %v5988_v28  ;;  %v6064_v46 = vld [vmem:[%s8292_s3 + $0xaac] ss:$16 sps:$4 sm:$0xff]   ;;  %v6063_v28 = vld [vmem:[%s8292_s3 + $0xaa0] ss:$16 sps:$4 sm:$0xff]  }
 0x160   :  { %4213 = vmatprep.subr.bf16.mxu0 %v5989_v30  ;;  %4725 = vmatprep.subr.bf16.mxu1 %v5992_v31  ;;  %v6066_v30 = vld [vmem:[%s8292_s3 + $0xaa8] ss:$16 sps:$4 sm:$0xff]   ;;  %v6067_v31 = vld [vmem:[%s8292_s3 + $0xac4] ss:$16 sps:$4 sm:$0xff]  }
 0x163   :  { %4215 = vmatpush1.bf16.msra.mxu0 %v5991_v32  ;;  %4727 = vmatpush1.bf16.msra.mxu1 %v5994_v35  ;;  %v6070_v32 = vld [vmem:[%s8292_s3 + $0xacc] ss:$16 sps:$4 sm:$0xff]   ;;  %v6069_v35 = vld [vmem:[%s8292_s3 + $0xac0] ss:$16 sps:$4 sm:$0xff]  }
 0x164   :  { %4217 = vmatprep.subr.bf16.mxu0 %v5995_v36  ;;  %4729 = vmatprep.subr.bf16.mxu1 %v5998_v37  ;;  %v6072_v36 = vld [vmem:[%s8292_s3 + $0xac8] ss:$16 sps:$4 sm:$0xff]   ;;  %v6073_v37 = vld [vmem:[%s8292_s3 + $0xae4] ss:$16 sps:$4 sm:$0xff]  }
 0x167   :  { %4219 = vmatpush1.bf16.msra.mxu0 %v5997_v17  ;;  %4731 = vmatpush1.bf16.msra.mxu1 %v6000_v38  ;;  %v6076_v17 = vld [vmem:[%s8292_s3 + $0xaec] ss:$16 sps:$4 sm:$0xff]   ;;  %v6075_v38 = vld [vmem:[%s8292_s3 + $0xae0] ss:$16 sps:$4 sm:$0xff]  }
 0x168   :  { %4221 = vmatprep.subr.bf16.mxu0 %v6001_v40  ;;  %4733 = vmatprep.subr.bf16.mxu1 %v6004_v24  ;;  %v6078_v40 = vld [vmem:[%s8292_s3 + $0xae8] ss:$16 sps:$4 sm:$0xff]   ;;  %v6079_v24 = vld [vmem:[%s8292_s3 + $0xb04] ss:$16 sps:$4 sm:$0xff]  }
 0x16b   :  { %4223 = vmatpush1.bf16.msra.mxu0 %v6003_v42  ;;  %4735 = vmatpush1.bf16.msra.mxu1 %v6006_v43  ;;  %v6082_v42 = vld [vmem:[%s8292_s3 + $0xb0c] ss:$16 sps:$4 sm:$0xff]   ;;  %v6081_v43 = vld [vmem:[%s8292_s3 + $0xb00] ss:$16 sps:$4 sm:$0xff]  }
 0x16c   :  { %4225 = vmatprep.subr.bf16.mxu0 %v6007_v44  ;;  %4737 = vmatprep.subr.bf16.mxu1 %v6010_v45  ;;  %v6084_v44 = vld [vmem:[%s8292_s3 + $0xb08] ss:$16 sps:$4 sm:$0xff]   ;;  %v6085_v45 = vld [vmem:[%s8292_s3 + $0xb24] ss:$16 sps:$4 sm:$0xff]  }
 0x16f   :  { %4227 = vmatpush1.bf16.msra.mxu0 %v6009_v47  ;;  %4739 = vmatpush1.bf16.msra.mxu1 %v6012_v48  ;;  %v6088_v47 = vld [vmem:[%s8292_s3 + $0xb2c] ss:$16 sps:$4 sm:$0xff]   ;;  %v6087_v48 = vld [vmem:[%s8292_s3 + $0xb20] ss:$16 sps:$4 sm:$0xff]  }
 0x170   :  { %4229 = vmatprep.subr.bf16.mxu0 %v6013_v49  ;;  %4741 = vmatprep.subr.bf16.mxu1 %v6016_v50  ;;  %v6090_v49 = vld [vmem:[%s8292_s3 + $0xb28] ss:$16 sps:$4 sm:$0xff]   ;;  %v6091_v50 = vld [vmem:[%s8292_s3 + $0xb44] ss:$16 sps:$4 sm:$0xff]  }
 0x173   :  { %4231 = vmatpush1.bf16.msra.mxu0 %v6015_v52  ;;  %4743 = vmatpush1.bf16.msra.mxu1 %v6018_v53  ;;  %v6094_v52 = vld [vmem:[%s8292_s3 + $0xb4c] ss:$16 sps:$4 sm:$0xff]   ;;  %v6093_v53 = vld [vmem:[%s8292_s3 + $0xb40] ss:$16 sps:$4 sm:$0xff]  }
 0x174   :  { %4233 = vmatprep.subr.bf16.mxu0 %v6019_v54  ;;  %4745 = vmatprep.subr.bf16.mxu1 %v6022_v55  ;;  %v6096_v54 = vld [vmem:[%s8292_s3 + $0xb48] ss:$16 sps:$4 sm:$0xff]   ;;  %v6097_v55 = vld [vmem:[%s8292_s3 + $0xb64] ss:$16 sps:$4 sm:$0xff]  }
 0x177   :  { %4235 = vmatpush1.bf16.msra.mxu0 %v6021_v56  ;;  %4747 = vmatpush1.bf16.msra.mxu1 %v6024_v57  ;;  %v6100_v56 = vld [vmem:[%s8292_s3 + $0xb6c] ss:$16 sps:$4 sm:$0xff]   ;;  %v6099_v57 = vld [vmem:[%s8292_s3 + $0xb60] ss:$16 sps:$4 sm:$0xff]  }
 0x178   :  { %4237 = vmatprep.subr.bf16.mxu0 %v6025_v58  ;;  %4749 = vmatprep.subr.bf16.mxu1 %v6028_v59  ;;  %v6102_v58 = vld [vmem:[%s8292_s3 + $0xb68] ss:$16 sps:$4 sm:$0xff]   ;;  %v6103_v59 = vld [vmem:[%s8292_s3 + $0xb84] ss:$16 sps:$4 sm:$0xff]  }
 0x17b   :  { %4239 = vmatpush1.bf16.msra.mxu0 %v6027_v60  ;;  %4751 = vmatpush1.bf16.msra.mxu1 %v6030_v61  ;;  %v6105_v60 = vld [vmem:[%s8292_s3 + $0xb80] ss:$16 sps:$4 sm:$0xff]   ;;  %v6108_v61 = vld [vmem:[%s8292_s3 + $0xb88] ss:$16 sps:$4 sm:$0xff]  }
 0x17c   :  { %4241 = vmatprep.subr.bf16.mxu0 %v6031_v62  ;;  %4753 = vmatprep.subr.bf16.mxu1 %v6034_v63  ;;  %v6109_v62 = vld [vmem:[%s8292_s3 + $0xba4] ss:$16 sps:$4 sm:$0xff]   ;;  %v6112_v63 = vld [vmem:[%s8292_s3 + $0xbac] ss:$16 sps:$4 sm:$0xff]  }
 0x17e   :  { %2519 = vmatmul.mubr.f32.vlgmr.msra.gmra.mrb[0].mxu0 %v7321_v51  ;;  %3087 = vmatmul.mubr.f32.vlgmr.msra.gmra.mrb[0].mxu1 %v7321_v51  ;;  %v6046_v51 = vld [vmem:[%s8292_s3 + $0xa4c] ss:$16 sps:$4 sm:$0xff]  }
 0x17f   :  { %4243 = vmatpush1.bf16.msra.mxu0 %v6033_v0  ;;  %4755 = vmatpush1.bf16.msra.mxu1 %v6036_v2  ;;  %v6111_v0 = vld [vmem:[%s8292_s3 + $0xba0] ss:$16 sps:$4 sm:$0xff]   ;;  %v6114_v2 = vld [vmem:[%s8292_s3 + $0xba8] ss:$16 sps:$4 sm:$0xff]  }
 0x180   :  { %4245 = vmatprep.subr.bf16.mxu0 %v6037_v3  ;;  %4757 = vmatprep.subr.bf16.mxu1 %v6040_v4  ;;  %v6115_v3 = vld [vmem:[%s8292_s3 + $0xbc4] ss:$16 sps:$4 sm:$0xff]   ;;  %v6118_v4 = vld [vmem:[%s8292_s3 + $0xbcc] ss:$16 sps:$4 sm:$0xff]  }
 0x181   :  { %2589 = vmatprep.mubr.f32.mxu0 %v2136_v5  ;;  %3157 = vmatprep.mubr.f32.mxu1 %v2136_v5  ;;  %v277_v5 = vld [vmem:[%s8290_s1 + $0x18] sm:$0xff] }
 0x183   :  { %4247 = vmatpush1.bf16.msra.mxu0 %v6039_v6  ;;  %4759 = vmatpush1.bf16.msra.mxu1 %v6042_v7  ;;  %v281_v6 = vld [vmem:[#allocation2 + $0x18] sm:$0xff]  ;;  %v6117_v7 = vld [vmem:[%s8292_s3 + $0xbc0] ss:$16 sps:$4 sm:$0xff]  }
 0x184   :  { %4249 = vmatprep.subr.bf16.mxu0 %v6043_v8  ;;  %4761 = vmatprep.subr.bf16.mxu1 %v6046_v51  ;;  %v6120_v8 = vld [vmem:[%s8292_s3 + $0xbc8] ss:$16 sps:$4 sm:$0xff]   ;;  %v6121_v51 = vld [vmem:[%s8292_s3 + $0xbe4] ss:$16 sps:$4 sm:$0xff]  }
 0x187   :  { %4251 = vmatpush1.bf16.msra.mxu0 %v6045_v9  ;;  %4763 = vmatpush1.bf16.msra.mxu1 %v6048_v10  ;;  %v6124_v9 = vld [vmem:[%s8292_s3 + $0xbec] ss:$16 sps:$4 sm:$0xff]   ;;  %v7711_v10 = vmul.f32 %v281_v6, %v277_v5 }
 0x188   :  { %4253 = vmatprep.subr.bf16.mxu0 %v6049_v11  ;;  %4765 = vmatprep.subr.bf16.mxu1 %v6052_v12  ;;  %v311_v11 = vcombine.high %v6899_v18, %v6899_v18  ;;  %v6123_v12 = vld [vmem:[%s8292_s3 + $0xbe0] ss:$16 sps:$4 sm:$0xff]   ;;  %v6130_v18 = vld [vmem:[%s8292_s3 + $0xc0c] ss:$16 sps:$4 sm:$0xff]  }
 0x189   :  { %v6154_v6 = vld [vmem:[%s8292_s3 + $0xc8c] ss:$16 sps:$4 sm:$0xff]  }
 0x18b   :  { %4255 = vmatpush1.bf16.msra.mxu0 %v6051_v13  ;;  %4767 = vmatpush1.bf16.msra.mxu1 %v6054_v15  ;;  %v6126_v13 = vld [vmem:[%s8292_s3 + $0xbe8] ss:$16 sps:$4 sm:$0xff]   ;;  %v6127_v15 = vld [vmem:[%s8292_s3 + $0xc04] ss:$16 sps:$4 sm:$0xff]  }
 0x18c   :  { %4257 = vmatprep.subr.bf16.mxu0 %v6055_v16  ;;  %4769 = vmatprep.subr.bf16.mxu1 %v6058_v21  ;;  %v7729_v16 = vrot.slane %v7711_v10, %v6601_v20  ;;  %v325_v21 = vrot.slane %v311_v11, %v6601_v20 }
 0x18f   :  { %4259 = vmatpush1.bf16.msra.mxu0 %v6057_v22  ;;  %4771 = vmatpush1.bf16.msra.mxu1 %v6060_v23  ;;  %v326_v22 = vcombine.high %v6912_v26, %v6912_v26  ;;  %v288_v23 = vmul.f32 %v7293_v41, %v7293_v41  ;;  %v6133_v26 = vld [vmem:[%s8292_s3 + $0xc24] ss:$16 sps:$4 sm:$0xff]   ;;  %v6136_v41 = vld [vmem:[%s8292_s3 + $0xc2c] ss:$16 sps:$4 sm:$0xff]  }
 0x190   :  { %4261 = vmatprep.subr.bf16.mxu0 %v6061_v25  ;;  %4773 = vmatprep.subr.bf16.mxu1 %v6064_v46  ;;  %v6129_v25 = vld [vmem:[%s8292_s3 + $0xc00] ss:$16 sps:$4 sm:$0xff]   ;;  %v6132_v46 = vld [vmem:[%s8292_s3 + $0xc08] ss:$16 sps:$4 sm:$0xff]  }
 0x193   :  { %4263 = vmatpush1.bf16.msra.mxu0 %v6063_v28  ;;  %4775 = vmatpush1.bf16.msra.mxu1 %v6066_v30  ;;  %v437_v28 = vcombine.high %v6916_v27, %v6916_v27  ;;  %v2152_v30 = vcombine.high %v7729_v16, %v7729_v16  ;;  %v388_v27 = vsel %vm378_vm0, %v326_v22, 0.0  ;;  %v6153_v22 = vld [vmem:[%s8292_s3 + $0xc80] ss:$16 sps:$4 sm:$0xff]  }
 0x194   :  { %4265 = vmatprep.subr.bf16.mxu0 %v6067_v31  ;;  %4777 = vmatprep.subr.bf16.mxu1 %v6070_v32  ;;  %v327_v31 = vcombine.high %v325_v21, %v325_v21  ;;  %v328_v32 = vcombine.high %v288_v23, %v288_v23 }
 0x197   :  { %4267 = vmatpush1.bf16.msra.mxu0 %v6069_v35  ;;  %4779 = vmatpush1.bf16.msra.mxu1 %v6072_v36  ;;  %v6135_v35 = vld [vmem:[%s8292_s3 + $0xc20] ss:$16 sps:$4 sm:$0xff]   ;;  %v6138_v36 = vld [vmem:[%s8292_s3 + $0xc28] ss:$16 sps:$4 sm:$0xff]  }
 0x198   :  { %4269 = vmatprep.subr.bf16.mxu0 %v6073_v37  ;;  %4781 = vmatprep.subr.bf16.mxu1 %v6076_v17  ;;  %v335_v37 = vrot.slane %v288_v23, %v6601_v20  ;;  %v389_v17 = vadd.f32 %v388_v27, %v6933_v33  ;;  %v414_v33 = vmul.f32 %v7305_v29, %v7305_v29  ;;  %v6156_v23 = vld [vmem:[%s8292_s3 + $0xc88] ss:$16 sps:$4 sm:$0xff]  }
 0x19b   :  { %4271 = vmatpush1.bf16.msra.mxu0 %v6075_v38  ;;  %4783 = vmatpush1.bf16.msra.mxu1 %v6078_v40  ;;  %v451_v38 = vrot.slane %v437_v28, %v6601_v20  ;;  %v6139_v40 = vld [vmem:[%s8292_s3 + $0xc44] ss:$16 sps:$4 sm:$0xff]   ;;  %v6160_v28 = vld [vmem:[%s8292_s3 + $0xcac] ss:$16 sps:$4 sm:$0xff]  }
 0x19c   :  { %4273 = vmatprep.subr.bf16.mxu0 %v6079_v24  ;;  %4785 = vmatprep.subr.bf16.mxu1 %v6082_v42  ;;  %v6142_v24 = vld [vmem:[%s8292_s3 + $0xc4c] ss:$16 sps:$4 sm:$0xff]   ;;  %v289_v42 = vmul.f32 %v277_v5, %v277_v5  ;;  %v6151_v5 = vld [vmem:[%s8292_s3 + $0xc84] ss:$16 sps:$4 sm:$0xff]  }
 0x19f   :  { %4275 = vmatpush1.bf16.msra.mxu0 %v6081_v43  ;;  %4787 = vmatpush1.bf16.msra.mxu1 %v6084_v44  ;;  %v342_v43 = vrot.slane %v328_v32, %v6601_v20  ;;  %v392_v44 = vsel %vm378_vm0, %v327_v31, 0.0 }
 0x1a0   :  { %4277 = vmatprep.subr.bf16.mxu0 %v6085_v45  ;;  %4789 = vmatprep.subr.bf16.mxu1 %v6088_v47  ;;  %v343_v45 = vcombine.high %v335_v37, %v335_v37 }
 0x1a3   :  { %4279 = vmatpush1.bf16.msra.mxu0 %v6087_v48  ;;  %4791 = vmatpush1.bf16.msra.mxu1 %v6090_v49  ;;  %v452_v48 = vcombine.high %v6937_v34, %v6937_v34  ;;  %v394_v49 = vsel %vm378_vm0, %v335_v37, 0.0  ;;  %v6148_v34 = vld [vmem:[%s8292_s3 + $0xc6c] ss:$16 sps:$4 sm:$0xff]  }
 0x1a4   :  { %4281 = vmatprep.subr.bf16.mxu0 %v6091_v50  ;;  %4793 = vmatprep.subr.bf16.mxu1 %v6094_v52  ;;  %v6141_v50 = vld [vmem:[%s8292_s3 + $0xc40] ss:$16 sps:$4 sm:$0xff]   ;;  %v6144_v52 = vld [vmem:[%s8292_s3 + $0xc48] ss:$16 sps:$4 sm:$0xff]  }
 0x1a7   :  { %4283 = vmatpush1.bf16.msra.mxu0 %v6093_v53  ;;  %4795 = vmatpush1.bf16.msra.mxu1 %v6096_v54  ;;  %v6145_v53 = vld [vmem:[%s8292_s3 + $0xc64] ss:$16 sps:$4 sm:$0xff]   ;;  %v344_v54 = vcombine.high %v342_v43, %v342_v43 }
 0x1a8   :  { %4285 = vmatprep.subr.bf16.mxu0 %v6097_v55  ;;  %4797 = vmatprep.subr.bf16.mxu1 %v6100_v56  ;;  %v345_v55 = vcombine.high %v289_v42, %v289_v42  ;;  %v352_v56 = vrot.slane %v289_v42, %v6601_v20  ;;  %v6163_v42 = vld [vmem:[%s8292_s3 + $0xcc4] ss:$16 sps:$4 sm:$0xff]  }
 0x1ab   :  { %4287 = vmatpush1.bf16.msra.mxu0 %v6099_v57  ;;  %4799 = vmatpush1.bf16.msra.mxu1 %v6102_v58  ;;  %v396_v57 = vsel %vm378_vm0, %v343_v45, 0.0 }
 0x1ac   :  { %4289 = vmatprep.subr.bf16.mxu0 %v6103_v59  ;;  %4801 = vmatprep.subr.bf16.mxu1 %v6106_v19  ;;  %v453_v59 = vcombine.high %v451_v38, %v451_v38  ;;  %v454_v19 = vcombine.high %v414_v33, %v414_v33 }
 0x1af   :  { %4291 = vmatpush1.bf16.msra.mxu0 %v6105_v60  ;;  %4803 = vmatpush1.bf16.msra.mxu1 %v6108_v61  ;;  %v461_v60 = vrot.slane %v414_v33, %v6601_v20  ;;  %v398_v61 = vsel %vm378_vm0, %v342_v43, 0.0  ;;  %v6166_v43 = vld [vmem:[%s8292_s3 + $0xccc] ss:$16 sps:$4 sm:$0xff]  }
 0x1b0   :  { %4293 = vmatprep.subr.bf16.mxu0 %v6109_v62  ;;  %4805 = vmatprep.subr.bf16.mxu1 %v6112_v63  ;;  %v513_v62 = vsel %vm378_vm0, %v452_v48, 0.0  ;;  %v6147_v63 = vld [vmem:[%s8292_s3 + $0xc60] ss:$16 sps:$4 sm:$0xff]  }
 0x1b3   :  { %4295 = vmatpush1.bf16.msra.mxu0 %v6111_v0  ;;  %4807 = vmatpush1.bf16.msra.mxu1 %v6114_v2  ;;  %v6150_v0 = vld [vmem:[%s8292_s3 + $0xc68] ss:$16 sps:$4 sm:$0xff]  }
 0x1b4   :  { %4297 = vmatprep.subr.bf16.mxu0 %v6115_v3  ;;  %4809 = vmatprep.subr.bf16.mxu1 %v6118_v4  ;;  %v415_v3 = vmul.f32 %v7711_v10, %v7711_v10  ;;  %v515_v4 = vsel %vm378_vm0, %v451_v38, 0.0  ;;  %v6162_v38 = vld [vmem:[%s8292_s3 + $0xca8] ss:$16 sps:$4 sm:$0xff]  }
 0x1b7   :  { %4299 = vmatpush1.bf16.msra.mxu0 %v6117_v7  ;;  %4811 = vmatpush1.bf16.msra.mxu1 %v6120_v8  ;;  %v359_v7 = vrot.slane %v345_v55, %v6601_v20  ;;  %v360_v8 = vcombine.high %v352_v56, %v352_v56  ;;  %v6172_v55 = vld [vmem:[%s8292_s3 + $0xcec] ss:$16 sps:$4 sm:$0xff]  }
 0x1b8   :  { %4301 = vmatprep.subr.bf16.mxu0 %v6121_v51  ;;  %4813 = vmatprep.subr.bf16.mxu1 %v6124_v9  ;;  %v400_v51 = vsel %vm378_vm0, %v344_v54, 0.0  ;;  %v514_v9 = vadd.f32 %v513_v62, %v6952_v39  ;;  %v6169_v54 = vld [vmem:[%s8292_s3 + $0xce4] ss:$16 sps:$4 sm:$0xff]  }
 0x1b9   :  { %v406_v37 = vsel %vm378_vm0, %v359_v7, 0.0  ;;  %v6175_v62 = vld [vmem:[%s8292_s3 + $0xd04] ss:$16 sps:$4 sm:$0xff]  }
 0x1bb   :  { %4303 = vmatpush1.bf16.msra.mxu0 %v6123_v12  ;;  %4815 = vmatpush1.bf16.msra.mxu1 %v6126_v13  ;;  %v468_v12 = vrot.slane %v454_v19, %v6601_v20  ;;  %v469_v13 = vcombine.high %v461_v60, %v461_v60  ;;  %v6171_v19 = vld [vmem:[%s8292_s3 + $0xce0] ss:$16 sps:$4 sm:$0xff]  }
 0x1bc   :  { %4305 = vmatprep.subr.bf16.mxu0 %v6127_v15  ;;  %4817 = vmatprep.subr.bf16.mxu1 %v6130_v18  ;;  %v517_v15 = vsel %vm378_vm0, %v453_v59, 0.0  ;;  %v402_v18 = vsel %vm378_vm0, %v352_v56, 0.0 }
 0x1bd   :  { %v470_v27 = vcombine.high %v468_v12, %v468_v12 }
 0x1be   :  { %2590 = vmatmul.mubr.f32.vlgmr.msra.gmra.mrb[0].mxu0 %v7525_v1  ;;  %3158 = vmatmul.mubr.f32.vlgmr.msra.gmra.mrb[0].mxu1 %v7525_v1  ;;  %v390_v1 = vsel %vm378_vm0, %v325_v21, 0.0  ;;  %v516_v21 = vadd.f32 %v515_v4, %v514_v9  ;;  %v6177_v4 = vld [vmem:[%s8292_s3 + $0xd00] ss:$16 sps:$4 sm:$0xff]   ;;  %v6186_v9 = vld [vmem:[%s8292_s3 + $0xd28] ss:$16 sps:$4 sm:$0xff]  }
 0x1bf   :  { %4307 = vmatpush1.bf16.msra.mxu0 %v6129_v25  ;;  %4819 = vmatpush1.bf16.msra.mxu1 %v6132_v46  ;;  %v391_v47 = vadd.f32 %v390_v1, %v389_v17  ;;  %v519_v25 = vsel %vm378_vm0, %v461_v60, 0.0  ;;  %v6157_v46 = vld [vmem:[%s8292_s3 + $0xca4] ss:$16 sps:$4 sm:$0xff]   ;;  %v6159_v1 = vld [vmem:[%s8292_s3 + $0xca0] ss:$16 sps:$4 sm:$0xff]  }
 0x1c0   :  { %4309 = vmatprep.subr.bf16.mxu0 %v6133_v26  ;;  %4821 = vmatprep.subr.bf16.mxu1 %v6136_v41  ;;  %v361_v26 = vcombine.high %v359_v7, %v359_v7  ;;  %v404_v41 = vsel %vm378_vm0, %v360_v8, 0.0  ;;  %v518_v31 = vadd.f32 %v517_v15, %v516_v21  ;;  %v6174_v60 = vld [vmem:[%s8292_s3 + $0xce8] ss:$16 sps:$4 sm:$0xff]   ;;  %v6184_v7 = vld [vmem:[%s8292_s3 + $0xd2c] ss:$16 sps:$4 sm:$0xff]  }
 0x1c1   :  { %2660 = vmatprep.mubr.f32.mxu0 %v2152_v30  ;;  %3228 = vmatprep.mubr.f32.mxu1 %v2152_v30  ;;  %v393_v29 = vadd.f32 %v392_v44, %v391_v47  ;;  %v471_v30 = vcombine.high %v415_v3, %v415_v3  ;;  %v6192_v15 = vld [vmem:[%s8292_s3 + $0xd48] ss:$16 sps:$4 sm:$0xff]   ;;  %v6196_v21 = vld [vmem:[%s8292_s3 + $0xd6c] ss:$16 sps:$4 sm:$0xff]  }
 0x1c2   :  { %v520_v17 = vadd.f32 %v519_v25, %v518_v31  ;;  %v408_v44 = vsel %vm378_vm0, %v361_v26, 0.0  ;;  %v6202_v25 = vld [vmem:[%s8292_s3 + $0xd8c] ss:$16 sps:$4 sm:$0xff]   ;;  %v6205_v26 = vld [vmem:[%s8292_s3 + $0xda4] ss:$16 sps:$4 sm:$0xff]  }
 0x1c3   :  { %4311 = vmatpush1.bf16.msra.mxu0 %v6135_v35  ;;  %4823 = vmatpush1.bf16.msra.mxu1 %v6138_v36  ;;  %v395_v58 = vadd.f32 %v394_v49, %v393_v29  ;;  %v478_v35 = vrot.slane %v415_v3, %v6601_v20  ;;  %v521_v36 = vsel %vm378_vm0, %v469_v13, 0.0  ;;  %v485_v47 = vrot.slane %v471_v30, %v6601_v20  ;;  %v6168_v29 = vld [vmem:[%s8292_s3 + $0xcc8] ss:$16 sps:$4 sm:$0xff]   ;;  %v6189_v13 = vld [vmem:[%s8292_s3 + $0xd40] ss:$16 sps:$4 sm:$0xff]  }
 0x1c4   :  { %4313 = vmatprep.subr.bf16.mxu0 %v6139_v40  ;;  %4825 = vmatprep.subr.bf16.mxu1 %v6142_v24  ;;  %v523_v24 = vsel %vm378_vm0, %v468_v12, 0.0  ;;  %v522_v33 = vadd.f32 %v521_v36, %v520_v17  ;;  %v525_v49 = vsel %vm378_vm0, %v470_v27, 0.0  ;;  %v6190_v12 = vld [vmem:[%s8292_s3 + $0xd4c] ss:$16 sps:$4 sm:$0xff]   ;;  %v6207_v30 = vld [vmem:[%s8292_s3 + $0xda0] ss:$16 sps:$4 sm:$0xff]  }
 0x1c5   :  { %v397_v2 = vadd.f32 %v396_v57, %v395_v58  ;;  %v486_v48 = vcombine.high %v478_v35, %v478_v35  ;;  %v487_v57 = vcombine.high %v485_v47, %v485_v47  ;;  %v6210_v31 = vld [vmem:[%s8292_s3 + $0xda8] ss:$16 sps:$4 sm:$0xff]   ;;  %v6214_v27 = vld [vmem:[%s8292_s3 + $0xdcc] ss:$16 sps:$4 sm:$0xff]  }
 0x1c6   :  { %v6216_v36 = vld [vmem:[%s8292_s3 + $0xdc8] ss:$16 sps:$4 sm:$0xff]   ;;  %v6220_v17 = vld [vmem:[%s8292_s3 + $0xdec] ss:$16 sps:$4 sm:$0xff]  }
 0x1c7   :  { %4315 = vmatpush1.bf16.msra.mxu0 %v6141_v50  ;;  %4827 = vmatpush1.bf16.msra.mxu1 %v6144_v52  ;;  %v399_v11 = vadd.f32 %v398_v61, %v397_v2  ;;  %v524_v50 = vadd.f32 %v523_v24, %v522_v33  ;;  %v6165_v52 = vld [vmem:[%s8292_s3 + $0xcc0] ss:$16 sps:$4 sm:$0xff]   ;;  %v529_v58 = vsel %vm378_vm0, %v486_v48, 0.0  ;;  %v531_v61 = vsel %vm378_vm0, %v485_v47, 0.0  ;;  %v6223_v24 = vld [vmem:[%s8292_s3 + $0xe04] ss:$16 sps:$4 sm:$0xff]  }
 0x1c8   :  { %4317 = vmatprep.subr.bf16.mxu0 %v6145_v53  ;;  %4829 = vmatprep.subr.bf16.mxu1 %v6148_v34  ;;  %v527_v34 = vsel %vm378_vm0, %v478_v35, 0.0  ;;  %v533_v2 = vsel %vm378_vm0, %v487_v57, 0.0  ;;  %v6213_v35 = vld [vmem:[%s8292_s3 + $0xdc0] ss:$16 sps:$4 sm:$0xff]   ;;  %v6229_v33 = vld [vmem:[%s8292_s3 + $0xe24] ss:$16 sps:$4 sm:$0xff]  }
 0x1c9   :  { %v401_v39 = vadd.f32 %v400_v51, %v399_v11  ;;  %v526_v56 = vadd.f32 %v525_v49, %v524_v50  ;;  %v6183_v51 = vld [vmem:[%s8292_s3 + $0xd20] ss:$16 sps:$4 sm:$0xff]   ;;  %v6187_v11 = vld [vmem:[%s8292_s3 + $0xd44] ss:$16 sps:$4 sm:$0xff]   ;;  %v6234_v48 = vld [vmem:[%s8292_s3 + $0xe28] ss:$16 sps:$4 sm:$0xff]  }
 0x1ca   :  { %v6231_v47 = vld [vmem:[%s8292_s3 + $0xe20] ss:$16 sps:$4 sm:$0xff]   ;;  %v6235_v49 = vld [vmem:[%s8292_s3 + $0xe44] ss:$16 sps:$4 sm:$0xff]  }
 0x1cb   :  { %4319 = vmatpush1.bf16.msra.mxu0 %v6147_v63  ;;  %4831 = vmatpush1.bf16.msra.mxu1 %v6150_v0  ;;  %v403_v32 = vadd.f32 %v402_v18, %v401_v39  ;;  %v528_v59 = vadd.f32 %v527_v34, %v526_v56  ;;  %v6178_v63 = vld [vmem:[%s8292_s3 + $0xd0c] ss:$16 sps:$4 sm:$0xff]   ;;  %v6193_v18 = vld [vmem:[%s8292_s3 + $0xd64] ss:$16 sps:$4 sm:$0xff]   ;;  %v6237_v50 = vld [vmem:[%s8292_s3 + $0xe40] ss:$16 sps:$4 sm:$0xff]  }
 0x1cc   :  { %4321 = vmatprep.subr.bf16.mxu0 %v6151_v5  ;;  %4833 = vmatprep.subr.bf16.mxu1 %v6154_v6  ;;  %v6180_v5 = vld [vmem:[%s8292_s3 + $0xd08] ss:$16 sps:$4 sm:$0xff]   ;;  %v6181_v6 = vld [vmem:[%s8292_s3 + $0xd24] ss:$16 sps:$4 sm:$0xff]   ;;  %v6243_v34 = vld [vmem:[%s8292_s3 + $0xe60] ss:$16 sps:$4 sm:$0xff]  }
 0x1cd   :  { %v405_v40 = vadd.f32 %v404_v41, %v403_v32  ;;  %v530_v0 = vadd.f32 %v529_v58, %v528_v59  ;;  %v6199_v39 = vld [vmem:[%s8292_s3 + $0xd84] ss:$16 sps:$4 sm:$0xff]   ;;  %v6208_v41 = vld [vmem:[%s8292_s3 + $0xdac] ss:$16 sps:$4 sm:$0xff]   ;;  %v6249_v57 = vld [vmem:[%s8292_s3 + $0xe80] ss:$16 sps:$4 sm:$0xff]  }
 0x1ce   :  { %v6211_v32 = vld [vmem:[%s8292_s3 + $0xdc4] ss:$16 sps:$4 sm:$0xff]   ;;  %v6250_v56 = vld [vmem:[%s8292_s3 + $0xe8c] ss:$16 sps:$4 sm:$0xff]   ;;  %v6252_v58 = vld [vmem:[%s8292_s3 + $0xe88] ss:$16 sps:$4 sm:$0xff]  }
 0x1cf   :  { %4323 = vmatpush1.bf16.msra.mxu0 %v6153_v22  ;;  %4835 = vmatpush1.bf16.msra.mxu1 %v6156_v23  ;;  %v407_v45 = vadd.f32 %v406_v37, %v405_v40  ;;  %v532_v3 = vadd.f32 %v531_v61, %v530_v0  ;;  %v6195_v22 = vld [vmem:[%s8292_s3 + $0xd60] ss:$16 sps:$4 sm:$0xff]   ;;  %v6198_v23 = vld [vmem:[%s8292_s3 + $0xd68] ss:$16 sps:$4 sm:$0xff]   ;;  %v6217_v37 = vld [vmem:[%s8292_s3 + $0xde4] ss:$16 sps:$4 sm:$0xff]  }
 0x1d0   :  { %4325 = vmatprep.subr.bf16.mxu0 %v6157_v46  ;;  %4837 = vmatprep.subr.bf16.mxu1 %v6160_v28  ;;  %v6201_v46 = vld [vmem:[%s8292_s3 + $0xd80] ss:$16 sps:$4 sm:$0xff]   ;;  %v6204_v28 = vld [vmem:[%s8292_s3 + $0xd88] ss:$16 sps:$4 sm:$0xff]   ;;  %v6253_v59 = vld [vmem:[%s8292_s3 + $0xea4] ss:$16 sps:$4 sm:$0xff]  }
 0x1d1   :  { %v409_v53 = vadd.f32 %v408_v44, %v407_v45  ;;  %v534_v8 = vadd.f32 %v533_v2, %v532_v3  ;;  %v6222_v40 = vld [vmem:[%s8292_s3 + $0xde8] ss:$16 sps:$4 sm:$0xff]   ;;  %v6261_v0 = vld [vmem:[%s8292_s3 + $0xec0] ss:$16 sps:$4 sm:$0xff]   ;;  %v6265_v3 = vld [vmem:[%s8292_s3 + $0xee4] ss:$16 sps:$4 sm:$0xff]  }
 0x1d2   :  { %v6228_v44 = vld [vmem:[%s8292_s3 + $0xe08] ss:$16 sps:$4 sm:$0xff]  }
 0x1d3   :  { %4327 = vmatpush1.bf16.msra.mxu0 %v6159_v1  ;;  %4839 = vmatpush1.bf16.msra.mxu1 %v6162_v38  ;;  %v2137_v1 = vcombine.high %v7711_v10, %v7711_v10  ;;  %v6219_v38 = vld [vmem:[%s8292_s3 + $0xde0] ss:$16 sps:$4 sm:$0xff]   ;;  %v6226_v10 = vld [vmem:[%s8292_s3 + $0xe0c] ss:$16 sps:$4 sm:$0xff]   ;;  %v6258_v61 = vld [vmem:[%s8292_s3 + $0xea8] ss:$16 sps:$4 sm:$0xff]  }
 0x1d4   :  { %4329 = vmatprep.subr.bf16.mxu0 %v6163_v42  ;;  %4841 = vmatprep.subr.bf16.mxu1 %v6166_v43  ;;  %v6225_v43 = vld [vmem:[%s8292_s3 + $0xe00] ss:$16 sps:$4 sm:$0xff]   ;;  %v6264_v2 = vld [vmem:[%s8292_s3 + $0xec8] ss:$16 sps:$4 sm:$0xff]  }
 0x1d5   :  { %410 = vadd.xlane.f32.xlu0 %v409_v53  ;;  %v7976_v42 = vrot.slane %v2137_v1, %v6601_v20  ;;  %v6232_v20 = vld [vmem:[%s8292_s3 + $0xe2c] ss:$16 sps:$4 sm:$0xff]   ;;  %v6309_v1 = vld [vmem:[%s8292_s3 + $0xfc0] ss:$16 sps:$4 sm:$0xff]  }
 0x1d6   :  { %v6244_v53 = vld [vmem:[%s8292_s3 + $0xe6c] ss:$16 sps:$4 sm:$0xff]  }
 0x1d7   :  { %4331 = vmatpush1.bf16.msra.mxu0 %v6165_v52  ;;  %4843 = vmatpush1.bf16.msra.mxu1 %v6168_v29  ;;  %v2153_v45 = vcombine.high %v7976_v42, %v7976_v42  ;;  %v6240_v52 = vld [vmem:[%s8292_s3 + $0xe48] ss:$16 sps:$4 sm:$0xff]   ;;  %v6241_v29 = vld [vmem:[%s8292_s3 + $0xe64] ss:$16 sps:$4 sm:$0xff]  }
 0x1d8   :  { %4333 = vmatprep.subr.bf16.mxu0 %v6169_v54  ;;  %4845 = vmatprep.subr.bf16.mxu1 %v6172_v55  ;;  %v6246_v54 = vld [vmem:[%s8292_s3 + $0xe68] ss:$16 sps:$4 sm:$0xff]   ;;  %v6247_v55 = vld [vmem:[%s8292_s3 + $0xe84] ss:$16 sps:$4 sm:$0xff]  }
 0x1d9   :  { %535 = vadd.xlane.f32.xlu0 %v534_v8  ;;  %v6274_v8 = vld [vmem:[%s8292_s3 + $0xf0c] ss:$16 sps:$4 sm:$0xff]  }
 0x1db   :  { %4335 = vmatpush1.bf16.msra.mxu0 %v6171_v19  ;;  %4847 = vmatpush1.bf16.msra.mxu1 %v6174_v60  ;;  %v6256_v19 = vld [vmem:[%s8292_s3 + $0xeac] ss:$16 sps:$4 sm:$0xff]   ;;  %v6255_v60 = vld [vmem:[%s8292_s3 + $0xea0] ss:$16 sps:$4 sm:$0xff]  }
 0x1dc   :  { %4337 = vmatprep.subr.bf16.mxu0 %v6175_v62  ;;  %4849 = vmatprep.subr.bf16.mxu1 %v6178_v63  ;;  %v6259_v62 = vld [vmem:[%s8292_s3 + $0xec4] ss:$16 sps:$4 sm:$0xff]   ;;  %v6262_v63 = vld [vmem:[%s8292_s3 + $0xecc] ss:$16 sps:$4 sm:$0xff]  }
 0x1df   :  { %4339 = vmatpush1.bf16.msra.mxu0 %v6177_v4  ;;  %4851 = vmatpush1.bf16.msra.mxu1 %v6180_v5  ;;  %v6268_v4 = vld [vmem:[%s8292_s3 + $0xeec] ss:$16 sps:$4 sm:$0xff]   ;;  %v6267_v5 = vld [vmem:[%s8292_s3 + $0xee0] ss:$16 sps:$4 sm:$0xff]  }
 0x1e0   :  { %4341 = vmatprep.subr.bf16.mxu0 %v6181_v6  ;;  %4853 = vmatprep.subr.bf16.mxu1 %v6184_v7  ;;  %v6270_v6 = vld [vmem:[%s8292_s3 + $0xee8] ss:$16 sps:$4 sm:$0xff]   ;;  %v6271_v7 = vld [vmem:[%s8292_s3 + $0xf04] ss:$16 sps:$4 sm:$0xff]  }
 0x1e3   :  { %4343 = vmatpush1.bf16.msra.mxu0 %v6183_v51  ;;  %4855 = vmatpush1.bf16.msra.mxu1 %v6186_v9  ;;  %v6273_v51 = vld [vmem:[%s8292_s3 + $0xf00] ss:$16 sps:$4 sm:$0xff]   ;;  %v6276_v9 = vld [vmem:[%s8292_s3 + $0xf08] ss:$16 sps:$4 sm:$0xff]  }
 0x1e4   :  { %4345 = vmatprep.subr.bf16.mxu0 %v6187_v11  ;;  %4857 = vmatprep.subr.bf16.mxu1 %v6190_v12  ;;  %v6277_v11 = vld [vmem:[%s8292_s3 + $0xf24] ss:$16 sps:$4 sm:$0xff]   ;;  %v6280_v12 = vld [vmem:[%s8292_s3 + $0xf2c] ss:$16 sps:$4 sm:$0xff]  }
 0x1e7   :  { %4347 = vmatpush1.bf16.msra.mxu0 %v6189_v13  ;;  %4859 = vmatpush1.bf16.msra.mxu1 %v6192_v15  ;;  %v6279_v13 = vld [vmem:[%s8292_s3 + $0xf20] ss:$16 sps:$4 sm:$0xff]   ;;  %v6282_v15 = vld [vmem:[%s8292_s3 + $0xf28] ss:$16 sps:$4 sm:$0xff]  }
 0x1e8   :  { %4349 = vmatprep.subr.bf16.mxu0 %v6193_v18  ;;  %4861 = vmatprep.subr.bf16.mxu1 %v6196_v21  ;;  %v6283_v18 = vld [vmem:[%s8292_s3 + $0xf44] ss:$16 sps:$4 sm:$0xff]   ;;  %v6286_v21 = vld [vmem:[%s8292_s3 + $0xf4c] ss:$16 sps:$4 sm:$0xff]  }
 0x1eb   :  { %4351 = vmatpush1.bf16.msra.mxu0 %v6195_v22  ;;  %4863 = vmatpush1.bf16.msra.mxu1 %v6198_v23  ;;  %v6285_v22 = vld [vmem:[%s8292_s3 + $0xf40] ss:$16 sps:$4 sm:$0xff]   ;;  %v6288_v23 = vld [vmem:[%s8292_s3 + $0xf48] ss:$16 sps:$4 sm:$0xff]  }
 0x1ec   :  { %4353 = vmatprep.subr.bf16.mxu0 %v6199_v39  ;;  %4865 = vmatprep.subr.bf16.mxu1 %v6202_v25  ;;  %v6289_v39 = vld [vmem:[%s8292_s3 + $0xf64] ss:$16 sps:$4 sm:$0xff]   ;;  %v6292_v25 = vld [vmem:[%s8292_s3 + $0xf6c] ss:$16 sps:$4 sm:$0xff]  }
 0x1ef   :  { %4355 = vmatpush1.bf16.msra.mxu0 %v6201_v46  ;;  %4867 = vmatpush1.bf16.msra.mxu1 %v6204_v28  ;;  %v6291_v46 = vld [vmem:[%s8292_s3 + $0xf60] ss:$16 sps:$4 sm:$0xff]   ;;  %v6294_v28 = vld [vmem:[%s8292_s3 + $0xf68] ss:$16 sps:$4 sm:$0xff]  }
 0x1f0   :  { %4357 = vmatprep.subr.bf16.mxu0 %v6205_v26  ;;  %4869 = vmatprep.subr.bf16.mxu1 %v6208_v41  ;;  %v6295_v26 = vld [vmem:[%s8292_s3 + $0xf84] ss:$16 sps:$4 sm:$0xff]   ;;  %v6298_v41 = vld [vmem:[%s8292_s3 + $0xf8c] ss:$16 sps:$4 sm:$0xff]  }
 0x1f3   :  { %4359 = vmatpush1.bf16.msra.mxu0 %v6207_v30  ;;  %4871 = vmatpush1.bf16.msra.mxu1 %v6210_v31  ;;  %v6297_v30 = vld [vmem:[%s8292_s3 + $0xf80] ss:$16 sps:$4 sm:$0xff]   ;;  %v6300_v31 = vld [vmem:[%s8292_s3 + $0xf88] ss:$16 sps:$4 sm:$0xff]  }
 0x1f4   :  { %4361 = vmatprep.subr.bf16.mxu0 %v6211_v32  ;;  %4873 = vmatprep.subr.bf16.mxu1 %v6214_v27  ;;  %v6301_v32 = vld [vmem:[%s8292_s3 + $0xfa4] ss:$16 sps:$4 sm:$0xff]   ;;  %v6304_v27 = vld [vmem:[%s8292_s3 + $0xfac] ss:$16 sps:$4 sm:$0xff]  }
 0x1f7   :  { %4363 = vmatpush1.bf16.msra.mxu0 %v6213_v35  ;;  %4875 = vmatpush1.bf16.msra.mxu1 %v6216_v36  ;;  %v6303_v35 = vld [vmem:[%s8292_s3 + $0xfa0] ss:$16 sps:$4 sm:$0xff]   ;;  %v6306_v36 = vld [vmem:[%s8292_s3 + $0xfa8] ss:$16 sps:$4 sm:$0xff]  }
 0x1f8   :  { %4365 = vmatprep.subr.bf16.mxu0 %v6217_v37  ;;  %4877 = vmatprep.subr.bf16.mxu1 %v6220_v17  ;;  %v6307_v37 = vld [vmem:[%s8292_s3 + $0xfc4] ss:$16 sps:$4 sm:$0xff]   ;;  %v6310_v17 = vld [vmem:[%s8292_s3 + $0xfcc] ss:$16 sps:$4 sm:$0xff]  }
 0x1fb   :  { %4367 = vmatpush1.bf16.msra.mxu0 %v6219_v38  ;;  %4879 = vmatpush1.bf16.msra.mxu1 %v6222_v40  ;;  %v6312_v38 = vld [vmem:[%s8292_s3 + $0xfc8] ss:$16 sps:$4 sm:$0xff]   ;;  %v6313_v40 = vld [vmem:[%s8292_s3 + $0xfe4] ss:$16 sps:$4 sm:$0xff]  }
 0x1fc   :  { %4369 = vmatprep.subr.bf16.mxu0 %v6223_v24  ;;  %4881 = vmatprep.subr.bf16.mxu1 %v6226_v10  ;;  %v6316_v24 = vld [vmem:[%s8292_s3 + $0xfec] ss:$16 sps:$4 sm:$0xff]   ;;  %v6315_v10 = vld [vmem:[%s8292_s3 + $0xfe0] ss:$16 sps:$4 sm:$0xff]  }
 0x1fe   :  { %2661 = vmatmul.mubr.f32.vlgmr.msra.gmra.mrb[0].mxu0 %v7729_v16  ;;  %3229 = vmatmul.mubr.f32.vlgmr.msra.gmra.mrb[0].mxu1 %v7729_v16  ;;  %v6238_v16 = vld [vmem:[%s8292_s3 + $0xe4c] ss:$16 sps:$4 sm:$0xff]  }
 0x1ff   :  { %4371 = vmatpush1.bf16.msra.mxu0 %v6225_v43  ;;  %4883 = vmatpush1.bf16.msra.mxu1 %v6228_v44  ;;  %v6318_v43 = vld [vmem:[%s8292_s3 + $0xfe8] ss:$16 sps:$4 sm:$0xff]   ;;  %v3826_v44 = vld [vmem:[%s8294_s5 + $0x40] sm:$0xff]  }
 0x200   :  { %4373 = vmatprep.subr.bf16.mxu0 %v6229_v33  ;;  %4885 = vmatprep.subr.bf16.mxu1 %v6232_v20  ;;  %v3842_v33 = vld [vmem:[%s8294_s5 + $0xc0] sm:$0xff]  }
 0x201   :  { %2731 = vmatprep.mubr.f32.mxu0 %v2153_v45  ;;  %3299 = vmatprep.mubr.f32.mxu1 %v2153_v45  ;;  %v3692_v20 = vld [vmem:[%s8294_s5] sm:$0xff]  }
 0x202   :  { %v3834_v45 = vld [vmem:[%s8294_s5 + $0x80] sm:$0xff]  }
 0x203   :  { %4375 = vmatpush1.bf16.msra.mxu0 %v6231_v47  ;;  %4887 = vmatpush1.bf16.msra.mxu1 %v6234_v48  ;;  %v3827_v47 = vld [vmem:[%s8294_s5 + $0x48] sm:$0xff]  }
 0x204   :  { %4377 = vmatprep.subr.bf16.mxu0 %v6235_v49  ;;  %4889 = vmatprep.subr.bf16.mxu1 %v6238_v16  ;;  %v3843_v48 = vld [vmem:[%s8294_s5 + $0xc8] sm:$0xff]  }
 0x205   :  { %v3819_v49 = vld [vmem:[%s8294_s5 + $0x8] sm:$0xff]  }
 0x206   :  { %v3835_v16 = vld [vmem:[%s8294_s5 + $0x88] sm:$0xff]  }
 0x207   :  { %4379 = vmatpush1.bf16.msra.mxu0 %v6237_v50  ;;  %4891 = vmatpush1.bf16.msra.mxu1 %v6240_v52  ;;  %v3828_v50 = vld [vmem:[%s8294_s5 + $0x50] sm:$0xff]  }
 0x208   :  { %4381 = vmatprep.subr.bf16.mxu0 %v6241_v29  ;;  %4893 = vmatprep.subr.bf16.mxu1 %v6244_v53  ;;  %v3820_v52 = vld [vmem:[%s8294_s5 + $0x10] sm:$0xff]   ;;  %v3829_v53 = vld [vmem:[%s8294_s5 + $0x58] sm:$0xff]  }
 0x209   :  { %v3836_v29 = vld [vmem:[%s8294_s5 + $0x90] sm:$0xff]  }
 0x20b   :  { %4383 = vmatpush1.bf16.msra.mxu0 %v6243_v34  ;;  %4895 = vmatpush1.bf16.msra.mxu1 %v6246_v54  ;;  %v3845_v34 = vld [vmem:[%s8294_s5 + $0xd8] sm:$0xff]  }
 0x20c   :  { %4385 = vmatprep.subr.bf16.mxu0 %v6247_v55  ;;  %4897 = vmatprep.subr.bf16.mxu1 %v6250_v56  ;;  %v3821_v54 = vld [vmem:[%s8294_s5 + $0x18] sm:$0xff]   ;;  %v3830_v56 = vld [vmem:[%s8294_s5 + $0x60] sm:$0xff]  }
 0x20d   :  { %v3837_v55 = vld [vmem:[%s8294_s5 + $0x98] sm:$0xff]  }
 0x20f   :  { %4387 = vmatpush1.bf16.msra.mxu0 %v6249_v57  ;;  %4899 = vmatpush1.bf16.msra.mxu1 %v6252_v58  ;;  %v3846_v57 = vld [vmem:[%s8294_s5 + $0xe0] sm:$0xff]  }
 0x210   :  { %4389 = vmatprep.subr.bf16.mxu0 %v6253_v59  ;;  %4901 = vmatprep.subr.bf16.mxu1 %v6256_v19  ;;  %v3822_v58 = vld [vmem:[%s8294_s5 + $0x20] sm:$0xff]   ;;  %v3831_v19 = vld [vmem:[%s8294_s5 + $0x68] sm:$0xff]  }
 0x211   :  { %v3838_v59 = vld [vmem:[%s8294_s5 + $0xa0] sm:$0xff]  }
 0x213   :  { %4391 = vmatpush1.bf16.msra.mxu0 %v6255_v60  ;;  %4903 = vmatpush1.bf16.msra.mxu1 %v6258_v61  ;;  %v3847_v60 = vld [vmem:[%s8294_s5 + $0xe8] sm:$0xff]  }
 0x214   :  { %4393 = vmatprep.subr.bf16.mxu0 %v6259_v62  ;;  %4905 = vmatprep.subr.bf16.mxu1 %v6262_v63  ;;  %v3823_v61 = vld [vmem:[%s8294_s5 + $0x28] sm:$0xff]   ;;  %v3832_v63 = vld [vmem:[%s8294_s5 + $0x70] sm:$0xff]  }
 0x215   :  { %v3839_v62 = vld [vmem:[%s8294_s5 + $0xa8] sm:$0xff]  }
 0x217   :  { %4395 = vmatpush1.bf16.msra.mxu0 %v6261_v0  ;;  %4907 = vmatpush1.bf16.msra.mxu1 %v6264_v2  ;;  %v3848_v0 = vld [vmem:[%s8294_s5 + $0xf0] sm:$0xff]  }
 0x218   :  { %4397 = vmatprep.subr.bf16.mxu0 %v6265_v3  ;;  %4909 = vmatprep.subr.bf16.mxu1 %v6268_v4  ;;  %v3824_v2 = vld [vmem:[%s8294_s5 + $0x30] sm:$0xff]   ;;  %v3833_v4 = vld [vmem:[%s8294_s5 + $0x78] sm:$0xff]  }
 0x219   :  { %v3840_v3 = vld [vmem:[%s8294_s5 + $0xb0] sm:$0xff]  }
 0x21b   :  { %4399 = vmatpush1.bf16.msra.mxu0 %v6267_v5  ;;  %4911 = vmatpush1.bf16.msra.mxu1 %v6270_v6  ;;  %v3849_v5 = vld [vmem:[%s8294_s5 + $0xf8] sm:$0xff]  }
 0x21c   :  { %4401 = vmatprep.subr.bf16.mxu0 %v6271_v7  ;;  %4913 = vmatprep.subr.bf16.mxu1 %v6274_v8  ;;  %v3825_v6 = vld [vmem:[%s8294_s5 + $0x38] sm:$0xff]  }
 0x21d   :  { %v3841_v7 = vld [vmem:[%s8294_s5 + $0xb8] sm:$0xff]  }
 0x21f   :  { %4403 = vmatpush1.bf16.msra.mxu0 %v6273_v51  ;;  %4915 = vmatpush1.bf16.msra.mxu1 %v6276_v9 }
 0x220   :  { %4405 = vmatprep.subr.bf16.mxu0 %v6277_v11  ;;  %4917 = vmatprep.subr.bf16.mxu1 %v6280_v12 }
 0x223   :  { %4407 = vmatpush1.bf16.msra.mxu0 %v6279_v13  ;;  %4919 = vmatpush1.bf16.msra.mxu1 %v6282_v15  ;;  %v3314_v15 = vsub.s32 0, %v6581_v14 }
 0x224   :  { %4409 = vmatprep.subr.bf16.mxu0 %v6283_v18  ;;  %4921 = vmatprep.subr.bf16.mxu1 %v6286_v21  ;;  %v3322_v18 = vsub.s32 2, %v6581_v14 }
 0x227   :  { %4411 = vmatpush1.bf16.msra.mxu0 %v6285_v22  ;;  %4923 = vmatpush1.bf16.msra.mxu1 %v6288_v23  ;;  %v3310_v23 = vld [vmem:[%s8293_s4] sm:$0xf] }
 0x228   :  { %4413 = vmatprep.subr.bf16.mxu0 %v6289_v39  ;;  %4925 = vmatprep.subr.bf16.mxu1 %v6292_v25  ;;  %v3318_v39 = vsub.s32 1, %v6581_v14  ;;  %v3326_v25 = vsub.s32 3, %v6581_v14 }
 0x22b   :  { %4415 = vmatpush1.bf16.msra.mxu0 %v6291_v46  ;;  %4927 = vmatpush1.bf16.msra.mxu1 %v6294_v28  ;;  %v3315_v28 = vrot.slane %v3310_v23, %v3314_v15 }
 0x22c   :  { %4417 = vmatprep.subr.bf16.mxu0 %v6295_v26  ;;  %4929 = vmatprep.subr.bf16.mxu1 %v6298_v41  ;;  %v3323_v26 = vrot.slane %v3310_v23, %v3322_v18 }
 0x22f   :  { %4419 = vmatpush1.bf16.msra.mxu0 %v6297_v30  ;;  %4931 = vmatpush1.bf16.msra.mxu1 %v6300_v31  ;;  %v3319_v31 = vrot.slane %v3310_v23, %v3318_v39 }
 0x230   :  { %4421 = vmatprep.subr.bf16.mxu0 %v6301_v32  ;;  %4933 = vmatprep.subr.bf16.mxu1 %v6304_v27  ;;  %v3327_v32 = vrot.slane %v3310_v23, %v3326_v25 }
 0x233   :  { %4423 = vmatpush1.bf16.msra.mxu0 %v6303_v35  ;;  %4935 = vmatpush1.bf16.msra.mxu1 %v6306_v36 }
 0x234   :  { %4425 = vmatprep.subr.bf16.mxu0 %v6307_v37  ;;  %4937 = vmatprep.subr.bf16.mxu1 %v6310_v17 }
 0x237   :  { %4427 = vmatpush1.bf16.msra.mxu0 %v6309_v1  ;;  %4939 = vmatpush1.bf16.msra.mxu1 %v6312_v38 }
 0x238   :  { %4429 = vmatprep.subr.bf16.mxu0 %v6313_v40  ;;  %4941 = vmatprep.subr.bf16.mxu1 %v6316_v24 }
 0x23b   :  { %4431 = vmatpush1.bf16.msra.mxu0 %v6315_v10  ;;  %4943 = vmatpush1.bf16.msra.mxu1 %v6318_v43 }
 0x23c   :  { %4945 = vmatprep.subr.bf16.mxu0 %v3826_v44  ;;  %4977 = vmatprep.subr.bf16.mxu1 %v3842_v33 }
 0x23e   :  { %2732 = vmatmul.mubr.f32.vlgmr.msra.gmra.mrb[0].mxu0 %v7976_v42  ;;  %3300 = vmatmul.mubr.f32.vlgmr.msra.gmra.mrb[0].mxu1 %v7976_v42  ;;  %v3844_v42 = vld [vmem:[%s8294_s5 + $0xd0] sm:$0xff]  }
 0x23f   :  { %4947 = vmatpush3.bf16.msra.mxu0 %v3692_v20  ;;  %4979 = vmatpush3.bf16.msra.mxu1 %v3834_v45 }
 0x240   :  { %4949 = vmatprep.subr.bf16.mxu0 %v3827_v47  ;;  %4981 = vmatprep.subr.bf16.mxu1 %v3843_v48  ;;  %v3688_v47 = vld [vmem:[%s8295_s6] ss:$0 sm:$0xff]  ;;  %s6337_s6 = scalar_lea.vmem %s3630_s28, 32 }
 0x241   :  { %p6338_p5 = scmp.ne.s32.totalorder %s3630_s28, %s6337_s6  ;;  %p6343_p7 = scmp.lt.s32.totalorder %s6337_s6, %s6337_s6 }
 0x243   :  { %4951 = vmatpush3.bf16.msra.mxu0 %v3819_v49  ;;  %4983 = vmatpush3.bf16.msra.mxu1 %v3835_v16  ;;  %p6344_p8 = por %p6343_p7, %p6342_p6 }
 0x244   :  { %4953 = vmatprep.subr.bf16.mxu0 %v3828_v50  ;;  %4985 = vmatprep.subr.bf16.mxu1 %v3844_v42 }
 0x245   :  { %p6345_p9 = pnand %p6344_p8, %p6338_p5 }
 0x247   :  { %4955 = vmatpush3.bf16.msra.mxu0 %v3820_v52  ;;  %4987 = vmatpush3.bf16.msra.mxu1 %v3836_v29 }
 0x248   :  { %4957 = vmatprep.subr.bf16.mxu0 %v3829_v53  ;;  %4989 = vmatprep.subr.bf16.mxu1 %v3845_v34 }
 0x24b   :  { %4959 = vmatpush3.bf16.msra.mxu0 %v3821_v54  ;;  %4991 = vmatpush3.bf16.msra.mxu1 %v3837_v55 }
 0x24c   :  { %4961 = vmatprep.subr.bf16.mxu0 %v3830_v56  ;;  %4993 = vmatprep.subr.bf16.mxu1 %v3846_v57 }
 0x24f   :  { %4963 = vmatpush3.bf16.msra.mxu0 %v3822_v58  ;;  %4995 = vmatpush3.bf16.msra.mxu1 %v3838_v59 }
 0x250   :  { %4965 = vmatprep.subr.bf16.mxu0 %v3831_v19  ;;  %4997 = vmatprep.subr.bf16.mxu1 %v3847_v60 }
 0x253   :  { %4967 = vmatpush3.bf16.msra.mxu0 %v3823_v61  ;;  %4999 = vmatpush3.bf16.msra.mxu1 %v3839_v62 }
 0x254   :  { %4969 = vmatprep.subr.bf16.mxu0 %v3832_v63  ;;  %5001 = vmatprep.subr.bf16.mxu1 %v3848_v0 }
 0x257   :  { %4971 = vmatpush3.bf16.msra.mxu0 %v3824_v2  ;;  %5003 = vmatpush3.bf16.msra.mxu1 %v3840_v3 }
 0x258   :  { %4973 = vmatprep.subr.bf16.mxu0 %v3833_v4  ;;  %5005 = vmatprep.subr.bf16.mxu1 %v3849_v5 }
 0x25b   :  { %4975 = vmatpush3.bf16.msra.mxu0 %v3825_v6  ;;  %5007 = vmatpush3.bf16.msra.mxu1 %v3841_v7 }
 0x262   :  { %v411_v8 = vpop.xlane.xlu0 %410 }
 0x263   :  { %6319 = vrsqrt.f32 %v411_v8  ;;  %vm539_vm1 = vcmp.eq.f32.partialorder %v411_v8, inf  ;;  %v542_v12 = vand.u32 2147483648, %v411_v8  ;;  %vm541_vm2 = vcmp.eq.f32.partialorder %v411_v8, 0.0 }
 0x266   :  { %v536_v51 = vpop.xlane.xlu0 %535 }
 0x267   :  { %6321 = vrsqrt.f32 %v536_v51 }
 0x26d   :  { %v6320_v9 = vpop.eup %6319 }
 0x26e   :  { %v538_v11 = vmul.f32 %v6320_v9, %v411_v8 }
 0x270   :  { %v540_v13 = vsel %vm539_vm1, %v411_v8, %v538_v11 }
 0x271   :  { %v6322_v21 = vpop.eup %6321  ;;  %v543_v22 = vsel %vm541_vm2, %v542_v12, %v540_v13 }
 0x272   :  { %v545_v46 = vmul.f32 %v6322_v21, %v543_v22 }
 0x311   :  { %v2733_v41 = vpop.f32.mrb[0].mxu0  ;;  %v3301_v30 = vpop.f32.mrb[0].mxu1 }
 0x312   :  { %v3306_v27 = vmul.f32 %v2733_v41, %v545_v46  ;;  %v3308_v35 = vmul.f32 %v3301_v30, %v545_v46  ;;  %v2735_v36 = vpop.f32.mrb[1].mxu0  ;;  %v3303_v37 = vpop.f32.mrb[1].mxu1 }
 0x313   :  { %v3307_v17 = vmul.f32 %v2735_v36, %v545_v46  ;;  %v3309_v1 = vmul.f32 %v3303_v37, %v545_v46 }
 0x314   :  { %v3332_v38 = vadd.f32 %v3315_v28, %v3306_v27  ;;  %v3334_v40 = vadd.f32 %v3323_v26, %v3308_v35 }
 0x315   :  { %v3333_v24 = vadd.f32 %v3319_v31, %v3307_v17  ;;  %v3335_v10 = vadd.f32 %v3327_v32, %v3309_v1 }
 0x316   :  { %v3336_v14 = vmax.f32 %v3332_v38, 0.0  ;;  %v3338_v33 = vmax.f32 %v3334_v40, 0.0 }
 0x317   :  { %v3337_v43 = vmax.f32 %v3333_v24, 0.0  ;;  %v3339_v44 = vmax.f32 %v3335_v10, 0.0 }
 0x319   :  { %3539 = vmatprep.mubr.f32.mxu0 %v3337_v43  ;;  %3609 = vmatprep.mubr.f32.mxu1 %v3339_v44 }
 0x31a   :  { %3540 = vmatmul.mubr.f32.vlgmr.msra.gmra.mrb[2].mxu0 %v3336_v14  ;;  %3610 = vmatmul.mubr.f32.vlgmr.msra.gmra.mrb[2].mxu1 %v3338_v33 }
 0x3ed   :  { %v3882_v20 = vpop.f32.mrb[2].mxu0  ;;  %v3917_v45 = vpop.f32.mrb[2].mxu1 }
 0x3ee   :  { %v3883_v48 = vpop.f32.mrb[3].mxu0  ;;  %v3918_v49 = vpop.f32.mrb[3].mxu1 }
 0x3ef   :  { %v3884_v16 = vadd.f32 %v3883_v48, %v3882_v20  ;;  %v3919_v50 = vadd.f32 %v3918_v49, %v3917_v45 }
 0x3f1   :  { %v3542_v42 = vadd.f32 %v3884_v16, %v3688_v47 }
 0x3f3   :  { %v3612_v52 = vadd.f32 %v3919_v50, %v3542_v42 }
 0x3f5   :  { %v3615_v29 = vmul.f32 %v3612_v52, %v3612_v52 }
 0x3f7   :  { %v3616_v53 = vsel %vm378_vm0, %v3615_v29, 0.0 }
 0x3f8   :  { %3617 = vadd.xlane.f32.xlu1 %v3616_v53 }
 0x485   :  { %v3618_v34 = vpop.xlane.xlu1 %3617 }
 0x486   :  { %v3619_v54 = vmax.f32 %v3618_v34, 1e-24 }
 0x488   :  { %6323 = vrsqrt.f32 %v3619_v54 }
 0x492   :  { %v6324_v55 = vpop.eup %6323 }
 0x493   :  { %v3621_v56 = vmul.f32 %v6324_v55, %v3612_v52 }
 0x495   :  { %3622 = vst [vmem:[#allocation6] sm:$0x3] %v3621_v56 }
 0x496   :  { %6348 = shalt.err (!%p6345_p9)
}
 0x497   :  { %s6349_s8 = scalar_lea.hbm %s8296_s7, 32 }
 0x498   :  { %p6350_p10 = scmp.ne.s32.totalorder %s8296_s7, %s6349_s8  ;;  %p6353_p11 = scmp.lt.u32.totalorder %s6349_s8, %s8296_s7 }
 0x49a   :  { %p6355_p12 = pnand %p6353_p11, %p6350_p10 }
 0x49c   :  { %6358 = shalt.err (!%p6355_p12)
}
 0x49d   :  { %3632 = dma.vmem_to_hbm [thread:$0]  %s3630_s28, 32, %s8296_s7, [#allocation7]  }
 0x49e   :  { %6365 = dma.done.wait [#allocation7], 32  }
 0x49f   :  { %6366 = vsyncadd [#allocation7], 4294967264 }
 0x4a0   :  { %3636 = vsyncpa [#allocation7], 1 }
 0x4a1   :  { %3637 = vsyncmov [#allocation3] }
 0x4a4   :  { %s3638_s14 = vpop.sfrf %3637 }
 0x4a5   :  { %p3689_p13 = scmp.ne.s32.totalorder %s3638_s14, 0 }
 0x4a7   :  { %3642 = shalt.err (%p3689_p13)  }
 0x4a8   :  { %3644 = vsyncmov [#allocation3 + $0x1] }
 0x4ab   :  { %s3645_s15 = vpop.sfrf %3644 }
 0x4ac   :  { %p3690_p0 = scmp.ne.s32.totalorder %s3645_s15, 0 }
 0x4ae   :  { %3649 = shalt.err (%p3690_p0)  }

</bundles_post_ra>
